<compile_context>
chip_gen: v6e
topology: v6e:2x2x1
jax: 0.10.0
libtpu: 0.0.40
codegen_flags: <defaults>
</compile_context>

<pallas_src>
import functools

import numpy as np
import jax
import jax.numpy as jnp
from jax import lax
from jax.experimental import pallas as pl
from jax.experimental.pallas import tpu as pltpu

LANES = 128
STRIP = 8   # sublane strip: every per-pixel array inside the strip loop is exactly 1 vreg


# ------------------------------------------------------------------ kernel ---

def _quantum_kernel(params_ref, x_ref, out_ref, *, n_wires, spectrum_layer, rows, strip):
    """One (batch, pixel-tile) block.

    params_ref : SMEM (b, S*2*DIM*DIM) scalar-prefetched per-batch tables:
                   table 0      : W1 = U1 * diag(psi0)          (if S >= 2)   [re | im], row-major
                   tables 1..S-2: U_l                           (middle layers)
                   table S-1    : M  = U_S^dag Z U_S (Hermitian, off-diag pre-doubled);
                                  for S == 1, psi0 is folded into M as well.
    x_ref      : VMEM (c, rows, 128)   per-pixel RZ encoding angles
    out_ref    : VMEM (rows, 128)      <Z_wire0 (x) I...> expectation
    """
    W = n_wires
    DIM = 2 ** W
    S = spectrum_layer
    MAT = 2 * DIM * DIM
    n_strips = rows // strip
    bi = pl.program_id(0)

    # ---- per-batch scalar tables: read SMEM once per grid step (hoisted out of strip loop) ----
    def p(off):
        return params_ref[bi, off]

    mats = []
    for l in range(S):
        base = l * MAT
        re = [[p(base + r * DIM + c) for c in range(DIM)] for r in range(DIM)]
        im = [[p(base + DIM * DIM + r * DIM + c) for c in range(DIM)] for r in range(DIM)]
        mats.append((re, im))

    # Complement symmetry of the RZ phases: phi(~idx) = -phi(idx).
    # Keep only DIM/2 distinct cos/sin tiles; handle the sign symbolically (no negated tiles).
    canon, sign = [], []
    for idx in range(DIM):
        comp = (DIM - 1) ^ idx
        if comp < idx:
            canon.append(comp); sign.append(-1)
        else:
            canon.append(idx); sign.append(+1)

    def strip_body(s):
        if isinstance(s, int):
            r0 = s * strip
        else:
            r0 = pl.multiple_of(s * strip, strip)
        xh = [0.5 * x_ref[k, pl.ds(r0, strip), :] for k in range(W)]

        # phi_idx = sum_k s_k(idx) * x_k/2,  s_k = +1 if wire-k bit of idx set else -1 (wire0 = MSB)
        cos_t, sin_t = {}, {}
        for idx in range(DIM):
            if canon[idx] != idx:
                continue
            phi = None
            for k in range(W):
                bit = 1 << (W - 1 - k)
                term = xh[k] if (idx & bit) else -xh[k]
                phi = term if phi is None else phi + term
            cos_t[idx] = jnp.cos(phi)
            sin_t[idx] = jnp.sin(phi)

        def phase(idx):
            return cos_t[canon[idx]], sin_t[canon[idx]], sign[idx]

        if S >= 2:
            # layer 1 (psi0 folded into the matrix): v = W1 @ d,  d_c = cos_c + i*sgn_c*sin_c
            ure, uim = mats[0]
            v_re, v_im = [], []
            for r in range(DIM):
                acc_re = acc_im = None
                for c in range(DIM):
                    ur, ui = ure[r][c], uim[r][c]
                    cv, sv, sg = phase(c)
                    if sg > 0:
                        tre = ur * cv - ui * sv
                        tim = ui * cv + ur * sv
                    else:
                        tre = ur * cv + ui * sv
                        tim = ui * cv - ur * sv
                    acc_re = tre if acc_re is None else acc_re + tre
                    acc_im = tim if acc_im is None else acc_im + tim
                v_re.append(acc_re)
                v_im.append(acc_im)

            # middle layers: v = U_l @ (D (.) v)
            for l in range(1, S - 1):
                rre, rim = [], []
                for idx in range(DIM):
                    cv, sv, sg = phase(idx)
                    if sg > 0:
                        rre.append(cv * v_re[idx] - sv * v_im[idx])
                        rim.append(cv * v_im[idx] + sv * v_re[idx])
                    else:
                        rre.append(cv * v_re[idx] + sv * v_im[idx])
                        rim.append(cv * v_im[idx] - sv * v_re[idx])
                ure, uim = mats[l]
                v_re, v_im = [], []
                for r in range(DIM):
                    acc_re = acc_im = None
                    for c in range(DIM):
                        ur, ui = ure[r][c], uim[r][c]
                        tre = ur * rre[c] - ui * rim[c]
                        tim = ur * rim[c] + ui * rre[c]
                        acc_re = tre if acc_re is None else acc_re + tre
                        acc_im = tim if acc_im is None else acc_im + tim
                    v_re.append(acc_re)
                    v_im.append(acc_im)

            # final diag apply (the last ansatz block lives inside M): phi = D (.) v
            ph_re, ph_im = [], []
            for idx in range(DIM):
                cv, sv, sg = phase(idx)
                if sg > 0:
                    ph_re.append(cv * v_re[idx] - sv * v_im[idx])
                    ph_im.append(cv * v_im[idx] + sv * v_re[idx])
                else:
                    ph_re.append(cv * v_re[idx] + sv * v_im[idx])
                    ph_im.append(cv * v_im[idx] - sv * v_re[idx])
        else:
            # S == 1: both psi0 and the single ansatz block are folded into M; phi = d.
            ph_re, ph_im = [], []
            for idx in range(DIM):
                cv, sv, sg = phase(idx)
                ph_re.append(cv)
                ph_im.append(sv if sg > 0 else -sv)

        # Quadratic form with the Hermitian observable matrix (off-diagonals pre-doubled):
        #   out = sum_i M_ii |phi_i|^2 + sum_{i<j} [Re(M2_ij) Re(c_ij) - Im(M2_ij) Im(c_ij)],
        #   c_ij = conj(phi_i) phi_j.
        mre, mim = mats[S - 1]
        acc = None
        for i in range(DIM):
            prob = ph_re[i] * ph_re[i] + ph_im[i] * ph_im[i]
            term = mre[i][i] * prob
            acc = term if acc is None else acc + term
        for i in range(DIM):
            for j in range(i + 1, DIM):
                cr = ph_re[i] * ph_re[j] + ph_im[i] * ph_im[j]
                ci = ph_re[i] * ph_im[j] - ph_im[i] * ph_re[j]
                acc = acc + (mre[i][j] * cr - mim[i][j] * ci)
        out_ref[pl.ds(r0, strip), :] = acc

    if n_strips == 1:
        strip_body(0)
    else:
        # fori_loop (not unrolled / not a Python for) bounds live ranges per 8-row strip,
        # keeping the working set at ~1 vreg per array (no VMEM spills).
        def loop_body(s, carry):
            strip_body(s)
            return carry
        lax.fori_loop(0, n_strips, loop_body, 0)


# ------------------------------------------- wrapper-side gate precompute ---

def _precompute_params(qstyles, n_wires, spectrum_layer, ansatz_layer):
    """Per-batch tables flattened to (b, S*2*DIM*DIM) float32 (see kernel docstring)."""
    W = n_wires
    DIM = 2 ** W
    S = spectrum_layer
    qs = qstyles.astype(jnp.float32)

    eye2 = jnp.eye(2, dtype=jnp.complex64)

    # static CNOT-chain entangler (cnot(i, i+1) for i = 0..W-2, applied in order)
    ent_np = np.eye(DIM, dtype=np.complex64)
    for i in range(W - 1):
        cbit = 1 << (W - 1 - i)
        tbit = 1 << (W - 1 - (i + 1))
        P = np.zeros((DIM, DIM), np.complex64)
        for idx in range(DIM):
            j = idx ^ tbit if (idx & cbit) else idx
            P[j, idx] = 1.0
        ent_np = P @ ent_np
    ent = jnp.asarray(ent_np)

    # observable: Z on wire 0 (MSB), identity elsewhere ('ZI' exactly for W == 2)
    z = jnp.asarray(np.array(
        [1.0 if (i & (1 << (W - 1))) == 0 else -1.0 for i in range(DIM)], np.complex64))
    off_diag_x2 = jnp.asarray((2.0 - np.eye(DIM)).astype(np.complex64))

    def u3_mat(th, ph, lm):
        ct = jnp.cos(0.5 * th).astype(jnp.complex64)
        st = jnp.sin(0.5 * th).astype(jnp.complex64)
        el = jnp.exp(1j * lm.astype(jnp.complex64))
        ep = jnp.exp(1j * ph.astype(jnp.complex64))
        return jnp.stack([jnp.stack([ct, -el * st]),
                          jnp.stack([ep * st, ep * el * ct])])

    def embed(U, wire):                      # wire 0 = leftmost / MSB
        M = jnp.ones((1, 1), jnp.complex64)
        for w in range(W):
            M = jnp.kron(M, U if w == wire else eye2)
        return M

    def block_unitary(q_layer):              # q_layer: (A, W, 3)
        M = jnp.eye(DIM, dtype=jnp.complex64)
        for j in range(ansatz_layer):
            for k in range(W):
                M = embed(u3_mat(q_layer[j, k, 0], q_layer[j, k, 1],
                                 q_layer[j, k, 2]), k) @ M
            if W > 1:
                M = ent @ M
        return M

    def per_batch(q_b):                      # q_b: (S+1, A, W, 3)
        psi0 = block_unitary(q_b[0])[:, 0]   # layer-0 block applied to |0...0>
        blocks = [block_unitary(q_b[l + 1]) for l in range(S)]
        Us = blocks[S - 1]
        M = Us.conj().T @ (z[:, None] * Us)  # last ansatz block folded into the observable
        tables = []
        if S >= 2:
            tables.append(blocks[0] * psi0[None, :])         # psi0 folded into layer-1 matrix
            tables.extend(blocks[1:S - 1])                   # middle layers as-is
        else:
            M = (psi0.conj()[:, None] * M) * psi0[None, :]   # psi0 folded into the observable
        tables.append(M * off_diag_x2)                       # off-diagonals pre-doubled
        parts = []
        for T in tables:
            parts.append(jnp.real(T).reshape(-1))
            parts.append(jnp.imag(T).reshape(-1))
        return jnp.concatenate(parts).astype(jnp.float32)

    return jax.vmap(per_batch)(qs)           # (b, S * 2 * DIM * DIM)


# ----------------------------------------------------------------- wrapper ---

def quantum_layer_forward(x, qstyles, *, spectrum_layer, ansatz_layer, max_rows=256):
    b, hw, c = x.shape
    n_wires = c
    DIM = 2 ** n_wires
    assert spectrum_layer >= 1
    assert qstyles.shape == (b, spectrum_layer + 1, ansatz_layer, n_wires, 3)
    assert hw % LANES == 0, "hw must be a multiple of 128 lanes"
    # TODO(synk): ragged hw (not a multiple of 128) would need padding or a BoundedSlice path.

    total_rows = hw // LANES
    # largest divisor of total_rows <= max_rows, preferring multiples of 8 (sublane-dense)
    divs = [r for r in range(1, min(total_rows, max_rows) + 1) if total_rows % r == 0]
    mult8 = [r for r in divs if r % 8 == 0]
    rows = max(mult8) if mult8 else max(divs)
    n_tiles = total_rows // rows
    strip = STRIP if rows % STRIP == 0 else rows

    # pixel axis on lanes/sublanes: (b, c, n_tiles, rows, 128)
    # TODO(synk): on v5e, produce x channel-major upstream (fuse this relayout into the producer)
    # to avoid a standalone HBM read+write of x before the kernel.
    x_t = jnp.transpose(x, (0, 2, 1)).astype(jnp.float32)
    x_t = x_t.reshape(b, c, n_tiles, rows, LANES)

    params = _precompute_params(qstyles, n_wires, spectrum_layer, ansatz_layer)
    # NOTE: params is (b, S*2*DIM^2) in SMEM (padded to multiples of (8,128) words) -- fine for
    # DIM=4; for n_wires >= 4 or large b, switch to a per-batch VMEM BlockSpec instead.

    kernel = functools.partial(
        _quantum_kernel,
        n_wires=n_wires,
        spectrum_layer=spectrum_layer,
        rows=rows,
        strip=strip,
    )

    grid_spec = pltpu.PrefetchScalarGridSpec(
        num_scalar_prefetch=1,
        grid=(b, n_tiles),
        in_specs=[
            pl.BlockSpec((None, c, None, rows, LANES),
                         lambda bi, ti, prm: (bi, 0, ti, 0, 0)),
        ],
        out_specs=pl.BlockSpec((None, None, rows, LANES),
                               lambda bi, ti, prm: (bi, ti, 0, 0)),
    )

    pixels = b * hw
    per_px_flops = (8 * DIM * DIM) * max(spectrum_layer - 1, 0) \
        + 6 * DIM * spectrum_layer + 5 * DIM * DIM
    cost = pl.CostEstimate(
        flops=pixels * per_px_flops,
        transcendentals=pixels * DIM,
        bytes_accessed=int(x_t.size) * 4 + b * hw * 4 + int(params.size) * 4,
    )

    out = pl.pallas_call(
        kernel,
        out_shape=jax.ShapeDtypeStruct((b, n_tiles, rows, LANES), jnp.float32),
        grid_spec=grid_spec,
        compiler_params=pltpu.CompilerParams(
            dimension_semantics=("parallel", "parallel")),
        cost_estimate=cost,
    )(params, x_t)

    return out.reshape(b, hw)


# ---------------------------------------------------- numpy reference (CPU) ---

def reference_forward_np(x, qstyles, spectrum_layer, ansatz_layer):
    x = np.asarray(x, np.float64)
    qs = np.asarray(qstyles, np.float64)
    b, hw, c = x.shape
    W, DIM, N = c, 2 ** c, b * hw
    x2 = x.reshape(N, c)
    qsr = np.repeat(qs[:, None], hw, axis=1).reshape(
        N, spectrum_layer + 1, ansatz_layer, W, 3)
    state = np.zeros((N, DIM), np.complex128)
    state[:, 0] = 1.0
    I2 = np.eye(2, dtype=np.complex128)

    def embed(U, wire):  # U: (N,2,2), wire 0 is MSB
        full = np.ones((N, 1, 1), np.complex128)
        for w in range(W):
            M = U if w == wire else np.broadcast_to(I2, (N, 2, 2))
            d = full.shape[1]
            full = (full[:, :, None, :, None] * M[:, None, :, None, :]
                    ).reshape(N, 2 * d, 2 * d)
        return full

    def apply(state, U):
        return np.einsum('nij,nj->ni', U, state)

    def u3(p):
        th, ph, lm = p[:, 0], p[:, 1], p[:, 2]
        ct, st = np.cos(th / 2), np.sin(th / 2)
        m = np.empty((len(th), 2, 2), np.complex128)
        m[:, 0, 0] = ct
        m[:, 0, 1] = -np.exp(1j * lm) * st
        m[:, 1, 0] = np.exp(1j * ph) * st
        m[:, 1, 1] = np.exp(1j * (ph + lm)) * ct
        return m

    def rz(theta):
        m = np.zeros((len(theta), 2, 2), np.complex128)
        m[:, 0, 0] = np.exp(-0.5j * theta)
        m[:, 1, 1] = np.exp(0.5j * theta)
        return m

    def cnot_perm(control, target):
        cbit, tbit = 1 << (W - 1 - control), 1 << (W - 1 - target)
        P = np.zeros((DIM, DIM), np.complex128)
        for idx in range(DIM):
            j = idx ^ tbit if (idx & cbit) else idx
            P[j, idx] = 1.0
        return P

    def entangle(state):
        for i in range(W - 1):
            state = state @ cnot_perm(i, i + 1).T
        return state

    for j in range(ansatz_layer):
        for k in range(W):
            state = apply(state, embed(u3(qsr[:, 0, j, k, :]), k))
        if W > 1:
            state = entangle(state)
    for i in range(spectrum_layer):
        for k in range(W):
            state = apply(state, embed(rz(x2[:, k]), k))
        for j in range(ansatz_layer):
            for k in range(W):
                state = apply(state, embed(u3(qsr[:, i + 1, j, k, :]), k))
            if W > 1:
                state = entangle(state)

    signs = np.array([1.0 if (idx & (1 << (W - 1))) == 0 else -1.0
                      for idx in range(DIM)])
    return ((np.abs(state) ** 2) * signs[None, :]).sum(-1).reshape(b, hw)


# -------------------------------------------------------------------- main ---

if __name__ == "__main__":
    # in_features (= n_wires) = 2 so the module's hard-coded 'ZI' observable is exact.
    b, hw, n_wires = 2, 4096, 2          # hw = 64 x 64 spatial pixels (exercises the strip loop)
    spectrum_layer, ansatz_layer = 2, 2

    key = jax.random.PRNGKey(0)
    k1, k2 = jax.random.split(key)
    x = jax.random.uniform(k1, (b, hw, n_wires), jnp.float32, -1.0, 1.0)
    qstyles = jax.random.uniform(
        k2, (b, spectrum_layer + 1, ansatz_layer, n_wires, 3),
        jnp.float32, -np.pi, np.pi)

    out = quantum_layer_forward(
        x, qstyles, spectrum_layer=spectrum_layer, ansatz_layer=ansatz_layer)
    out = jax.block_until_ready(out)
    assert out.shape == (b, hw)

    ref = reference_forward_np(np.asarray(x), np.asarray(qstyles),
                               spectrum_layer, ansatz_layer)
    if not np.allclose(np.asarray(out), ref, atol=1e-3, rtol=1e-3):
        raise AssertionError("Pallas kernel does not match numpy reference")

    print("KERNEL_OK")
</pallas_src>

<mosaic_0001>
module attributes {stable_mosaic.version = 11 : i64} {
  func.func @_quantum_kernel(%arg0: i32, %arg1: i32, %arg2: memref<2x64xf32, #tpu.memory_space<smem>>, %arg3: memref<1x2x1x32x128xf32, #tpu.memory_space<vmem>>, %arg4: memref<1x1x32x128xf32, #tpu.memory_space<vmem>>) attributes {dimension_semantics = [#tpu.dimension_semantics<parallel>, #tpu.dimension_semantics<parallel>], iteration_bounds = array<i64: 2, 1>, scalar_prefetch = 1 : i64, scratch_operands = 0 : i64, tpu.core_type = #tpu.core_type<tc>, window_params = [{transform_indices = @transform_0, window_bounds = array<i64: 1, 2, 1, 32, 128>}, {transform_indices = @transform_1, window_bounds = array<i64: 1, 1, 32, 128>}]} {
    %0 = arith.index_cast %arg0 : i32 to index
    %c0 = arith.constant 0 : index
    %1 = memref.load %arg2[%0, %c0] : memref<2x64xf32, #tpu.memory_space<smem>>
    %2 = arith.index_cast %arg0 : i32 to index
    %c1 = arith.constant 1 : index
    %3 = memref.load %arg2[%2, %c1] : memref<2x64xf32, #tpu.memory_space<smem>>
    %4 = arith.index_cast %arg0 : i32 to index
    %c2 = arith.constant 2 : index
    %5 = memref.load %arg2[%4, %c2] : memref<2x64xf32, #tpu.memory_space<smem>>
    %6 = arith.index_cast %arg0 : i32 to index
    %c3 = arith.constant 3 : index
    %7 = memref.load %arg2[%6, %c3] : memref<2x64xf32, #tpu.memory_space<smem>>
    %8 = arith.index_cast %arg0 : i32 to index
    %c4 = arith.constant 4 : index
    %9 = memref.load %arg2[%8, %c4] : memref<2x64xf32, #tpu.memory_space<smem>>
    %10 = arith.index_cast %arg0 : i32 to index
    %c5 = arith.constant 5 : index
    %11 = memref.load %arg2[%10, %c5] : memref<2x64xf32, #tpu.memory_space<smem>>
    %12 = arith.index_cast %arg0 : i32 to index
    %c6 = arith.constant 6 : index
    %13 = memref.load %arg2[%12, %c6] : memref<2x64xf32, #tpu.memory_space<smem>>
    %14 = arith.index_cast %arg0 : i32 to index
    %c7 = arith.constant 7 : index
    %15 = memref.load %arg2[%14, %c7] : memref<2x64xf32, #tpu.memory_space<smem>>
    %16 = arith.index_cast %arg0 : i32 to index
    %c8 = arith.constant 8 : index
    %17 = memref.load %arg2[%16, %c8] : memref<2x64xf32, #tpu.memory_space<smem>>
    %18 = arith.index_cast %arg0 : i32 to index
    %c9 = arith.constant 9 : index
    %19 = memref.load %arg2[%18, %c9] : memref<2x64xf32, #tpu.memory_space<smem>>
    %20 = arith.index_cast %arg0 : i32 to index
    %c10 = arith.constant 10 : index
    %21 = memref.load %arg2[%20, %c10] : memref<2x64xf32, #tpu.memory_space<smem>>
    %22 = arith.index_cast %arg0 : i32 to index
    %c11 = arith.constant 11 : index
    %23 = memref.load %arg2[%22, %c11] : memref<2x64xf32, #tpu.memory_space<smem>>
    %24 = arith.index_cast %arg0 : i32 to index
    %c12 = arith.constant 12 : index
    %25 = memref.load %arg2[%24, %c12] : memref<2x64xf32, #tpu.memory_space<smem>>
    %26 = arith.index_cast %arg0 : i32 to index
    %c13 = arith.constant 13 : index
    %27 = memref.load %arg2[%26, %c13] : memref<2x64xf32, #tpu.memory_space<smem>>
    %28 = arith.index_cast %arg0 : i32 to index
    %c14 = arith.constant 14 : index
    %29 = memref.load %arg2[%28, %c14] : memref<2x64xf32, #tpu.memory_space<smem>>
    %30 = arith.index_cast %arg0 : i32 to index
    %c15 = arith.constant 15 : index
    %31 = memref.load %arg2[%30, %c15] : memref<2x64xf32, #tpu.memory_space<smem>>
    %32 = arith.index_cast %arg0 : i32 to index
    %c16 = arith.constant 16 : index
    %33 = memref.load %arg2[%32, %c16] : memref<2x64xf32, #tpu.memory_space<smem>>
    %34 = arith.index_cast %arg0 : i32 to index
    %c17 = arith.constant 17 : index
    %35 = memref.load %arg2[%34, %c17] : memref<2x64xf32, #tpu.memory_space<smem>>
    %36 = arith.index_cast %arg0 : i32 to index
    %c18 = arith.constant 18 : index
    %37 = memref.load %arg2[%36, %c18] : memref<2x64xf32, #tpu.memory_space<smem>>
    %38 = arith.index_cast %arg0 : i32 to index
    %c19 = arith.constant 19 : index
    %39 = memref.load %arg2[%38, %c19] : memref<2x64xf32, #tpu.memory_space<smem>>
    %40 = arith.index_cast %arg0 : i32 to index
    %c20 = arith.constant 20 : index
    %41 = memref.load %arg2[%40, %c20] : memref<2x64xf32, #tpu.memory_space<smem>>
    %42 = arith.index_cast %arg0 : i32 to index
    %c21 = arith.constant 21 : index
    %43 = memref.load %arg2[%42, %c21] : memref<2x64xf32, #tpu.memory_space<smem>>
    %44 = arith.index_cast %arg0 : i32 to index
    %c22 = arith.constant 22 : index
    %45 = memref.load %arg2[%44, %c22] : memref<2x64xf32, #tpu.memory_space<smem>>
    %46 = arith.index_cast %arg0 : i32 to index
    %c23 = arith.constant 23 : index
    %47 = memref.load %arg2[%46, %c23] : memref<2x64xf32, #tpu.memory_space<smem>>
    %48 = arith.index_cast %arg0 : i32 to index
    %c24 = arith.constant 24 : index
    %49 = memref.load %arg2[%48, %c24] : memref<2x64xf32, #tpu.memory_space<smem>>
    %50 = arith.index_cast %arg0 : i32 to index
    %c25 = arith.constant 25 : index
    %51 = memref.load %arg2[%50, %c25] : memref<2x64xf32, #tpu.memory_space<smem>>
    %52 = arith.index_cast %arg0 : i32 to index
    %c26 = arith.constant 26 : index
    %53 = memref.load %arg2[%52, %c26] : memref<2x64xf32, #tpu.memory_space<smem>>
    %54 = arith.index_cast %arg0 : i32 to index
    %c27 = arith.constant 27 : index
    %55 = memref.load %arg2[%54, %c27] : memref<2x64xf32, #tpu.memory_space<smem>>
    %56 = arith.index_cast %arg0 : i32 to index
    %c28 = arith.constant 28 : index
    %57 = memref.load %arg2[%56, %c28] : memref<2x64xf32, #tpu.memory_space<smem>>
    %58 = arith.index_cast %arg0 : i32 to index
    %c29 = arith.constant 29 : index
    %59 = memref.load %arg2[%58, %c29] : memref<2x64xf32, #tpu.memory_space<smem>>
    %60 = arith.index_cast %arg0 : i32 to index
    %c30 = arith.constant 30 : index
    %61 = memref.load %arg2[%60, %c30] : memref<2x64xf32, #tpu.memory_space<smem>>
    %62 = arith.index_cast %arg0 : i32 to index
    %c31 = arith.constant 31 : index
    %63 = memref.load %arg2[%62, %c31] : memref<2x64xf32, #tpu.memory_space<smem>>
    %64 = arith.index_cast %arg0 : i32 to index
    %c32 = arith.constant 32 : index
    %65 = memref.load %arg2[%64, %c32] : memref<2x64xf32, #tpu.memory_space<smem>>
    %66 = arith.index_cast %arg0 : i32 to index
    %c33 = arith.constant 33 : index
    %67 = memref.load %arg2[%66, %c33] : memref<2x64xf32, #tpu.memory_space<smem>>
    %68 = arith.index_cast %arg0 : i32 to index
    %c34 = arith.constant 34 : index
    %69 = memref.load %arg2[%68, %c34] : memref<2x64xf32, #tpu.memory_space<smem>>
    %70 = arith.index_cast %arg0 : i32 to index
    %c35 = arith.constant 35 : index
    %71 = memref.load %arg2[%70, %c35] : memref<2x64xf32, #tpu.memory_space<smem>>
    %72 = arith.index_cast %arg0 : i32 to index
    %c37 = arith.constant 37 : index
    %73 = memref.load %arg2[%72, %c37] : memref<2x64xf32, #tpu.memory_space<smem>>
    %74 = arith.index_cast %arg0 : i32 to index
    %c38 = arith.constant 38 : index
    %75 = memref.load %arg2[%74, %c38] : memref<2x64xf32, #tpu.memory_space<smem>>
    %76 = arith.index_cast %arg0 : i32 to index
    %c39 = arith.constant 39 : index
    %77 = memref.load %arg2[%76, %c39] : memref<2x64xf32, #tpu.memory_space<smem>>
    %78 = arith.index_cast %arg0 : i32 to index
    %c42 = arith.constant 42 : index
    %79 = memref.load %arg2[%78, %c42] : memref<2x64xf32, #tpu.memory_space<smem>>
    %80 = arith.index_cast %arg0 : i32 to index
    %c43 = arith.constant 43 : index
    %81 = memref.load %arg2[%80, %c43] : memref<2x64xf32, #tpu.memory_space<smem>>
    %82 = arith.index_cast %arg0 : i32 to index
    %c47 = arith.constant 47 : index
    %83 = memref.load %arg2[%82, %c47] : memref<2x64xf32, #tpu.memory_space<smem>>
    %84 = arith.index_cast %arg0 : i32 to index
    %c49 = arith.constant 49 : index
    %85 = memref.load %arg2[%84, %c49] : memref<2x64xf32, #tpu.memory_space<smem>>
    %86 = arith.index_cast %arg0 : i32 to index
    %c50 = arith.constant 50 : index
    %87 = memref.load %arg2[%86, %c50] : memref<2x64xf32, #tpu.memory_space<smem>>
    %88 = arith.index_cast %arg0 : i32 to index
    %c51 = arith.constant 51 : index
    %89 = memref.load %arg2[%88, %c51] : memref<2x64xf32, #tpu.memory_space<smem>>
    %90 = arith.index_cast %arg0 : i32 to index
    %c54 = arith.constant 54 : index
    %91 = memref.load %arg2[%90, %c54] : memref<2x64xf32, #tpu.memory_space<smem>>
    %92 = arith.index_cast %arg0 : i32 to index
    %c55 = arith.constant 55 : index
    %93 = memref.load %arg2[%92, %c55] : memref<2x64xf32, #tpu.memory_space<smem>>
    %94 = arith.index_cast %arg0 : i32 to index
    %c59 = arith.constant 59 : index
    %95 = memref.load %arg2[%94, %c59] : memref<2x64xf32, #tpu.memory_space<smem>>
    %c0_i32 = arith.constant 0 : i32
    %c4_i32 = arith.constant 4 : i32
    %96 = arith.addi %c0_i32, %c4_i32 : i32
    %c1_i32 = arith.constant 1 : i32
    scf.for %arg5 = %c0_i32 to %96 step %c1_i32  : i32 {
      %c8_i32 = arith.constant 8 : i32
      %97 = arith.muli %arg5, %c8_i32 : i32
      %98 = tpu.assume_multiple %97, 8 : i32
      %c0_1 = arith.constant 0 : index
      %c0_2 = arith.constant 0 : index
      %c0_3 = arith.constant 0 : index
      %99 = arith.index_cast %98 : i32 to index
      %c0_4 = arith.constant 0 : index
      %100 = vector.load %arg3[%c0_1, %c0_2, %c0_3, %99, %c0_4] : memref<1x2x1x32x128xf32, #tpu.memory_space<vmem>>, vector<1x1x1x8x128xf32>
      %101 = vector.shape_cast %100 : vector<1x1x1x8x128xf32> to vector<8x128xf32>
      %cst = arith.constant 5.000000e-01 : f32
      %102 = vector.broadcast %cst : f32 to vector<8x128xf32>
      %103 = arith.mulf %102, %101 : vector<8x128xf32>
      %c0_5 = arith.constant 0 : index
      %c1_6 = arith.constant 1 : index
      %c0_7 = arith.constant 0 : index
      %104 = arith.index_cast %98 : i32 to index
      %c0_8 = arith.constant 0 : index
      %105 = vector.load %arg3[%c0_5, %c1_6, %c0_7, %104, %c0_8] : memref<1x2x1x32x128xf32, #tpu.memory_space<vmem>>, vector<1x1x1x8x128xf32>
      %106 = vector.shape_cast %105 : vector<1x1x1x8x128xf32> to vector<8x128xf32>
      %cst_9 = arith.constant 5.000000e-01 : f32
      %107 = vector.broadcast %cst_9 : f32 to vector<8x128xf32>
      %108 = arith.mulf %107, %106 : vector<8x128xf32>
      %cst_10 = arith.constant 0.000000e+00 : f32
      %109 = vector.broadcast %cst_10 : f32 to vector<8x128xf32>
      %110 = arith.subf %109, %103 : vector<8x128xf32>
      %cst_11 = arith.constant 0.000000e+00 : f32
      %111 = vector.broadcast %cst_11 : f32 to vector<8x128xf32>
      %112 = arith.subf %111, %108 : vector<8x128xf32>
      %113 = arith.addf %110, %112 : vector<8x128xf32>
      %114 = math.cos %113 : vector<8x128xf32>
      %115 = math.sin %113 : vector<8x128xf32>
      %cst_12 = arith.constant 0.000000e+00 : f32
      %116 = vector.broadcast %cst_12 : f32 to vector<8x128xf32>
      %117 = arith.subf %116, %103 : vector<8x128xf32>
      %118 = arith.addf %117, %108 : vector<8x128xf32>
      %119 = math.cos %118 : vector<8x128xf32>
      %120 = math.sin %118 : vector<8x128xf32>
      %121 = vector.broadcast %1 : f32 to vector<8x128xf32>
      %122 = arith.mulf %121, %114 : vector<8x128xf32>
      %123 = vector.broadcast %33 : f32 to vector<8x128xf32>
      %124 = arith.mulf %123, %115 : vector<8x128xf32>
      %125 = arith.subf %122, %124 : vector<8x128xf32>
      %126 = vector.broadcast %33 : f32 to vector<8x128xf32>
      %127 = arith.mulf %126, %114 : vector<8x128xf32>
      %128 = vector.broadcast %1 : f32 to vector<8x128xf32>
      %129 = arith.mulf %128, %115 : vector<8x128xf32>
      %130 = arith.addf %127, %129 : vector<8x128xf32>
      %131 = vector.broadcast %3 : f32 to vector<8x128xf32>
      %132 = arith.mulf %131, %119 : vector<8x128xf32>
      %133 = vector.broadcast %35 : f32 to vector<8x128xf32>
      %134 = arith.mulf %133, %120 : vector<8x128xf32>
      %135 = arith.subf %132, %134 : vector<8x128xf32>
      %136 = vector.broadcast %35 : f32 to vector<8x128xf32>
      %137 = arith.mulf %136, %119 : vector<8x128xf32>
      %138 = vector.broadcast %3 : f32 to vector<8x128xf32>
      %139 = arith.mulf %138, %120 : vector<8x128xf32>
      %140 = arith.addf %137, %139 : vector<8x128xf32>
      %141 = arith.addf %125, %135 : vector<8x128xf32>
      %142 = arith.addf %130, %140 : vector<8x128xf32>
      %143 = vector.broadcast %5 : f32 to vector<8x128xf32>
      %144 = arith.mulf %143, %119 : vector<8x128xf32>
      %145 = vector.broadcast %37 : f32 to vector<8x128xf32>
      %146 = arith.mulf %145, %120 : vector<8x128xf32>
      %147 = arith.addf %144, %146 : vector<8x128xf32>
      %148 = vector.broadcast %37 : f32 to vector<8x128xf32>
      %149 = arith.mulf %148, %119 : vector<8x128xf32>
      %150 = vector.broadcast %5 : f32 to vector<8x128xf32>
      %151 = arith.mulf %150, %120 : vector<8x128xf32>
      %152 = arith.subf %149, %151 : vector<8x128xf32>
      %153 = arith.addf %141, %147 : vector<8x128xf32>
      %154 = arith.addf %142, %152 : vector<8x128xf32>
      %155 = vector.broadcast %7 : f32 to vector<8x128xf32>
      %156 = arith.mulf %155, %114 : vector<8x128xf32>
      %157 = vector.broadcast %39 : f32 to vector<8x128xf32>
      %158 = arith.mulf %157, %115 : vector<8x128xf32>
      %159 = arith.addf %156, %158 : vector<8x128xf32>
      %160 = vector.broadcast %39 : f32 to vector<8x128xf32>
      %161 = arith.mulf %160, %114 : vector<8x128xf32>
      %162 = vector.broadcast %7 : f32 to vector<8x128xf32>
      %163 = arith.mulf %162, %115 : vector<8x128xf32>
      %164 = arith.subf %161, %163 : vector<8x128xf32>
      %165 = arith.addf %153, %159 : vector<8x128xf32>
      %166 = arith.addf %154, %164 : vector<8x128xf32>
      %167 = vector.broadcast %9 : f32 to vector<8x128xf32>
      %168 = arith.mulf %167, %114 : vector<8x128xf32>
      %169 = vector.broadcast %41 : f32 to vector<8x128xf32>
      %170 = arith.mulf %169, %115 : vector<8x128xf32>
      %171 = arith.subf %168, %170 : vector<8x128xf32>
      %172 = vector.broadcast %41 : f32 to vector<8x128xf32>
      %173 = arith.mulf %172, %114 : vector<8x128xf32>
      %174 = vector.broadcast %9 : f32 to vector<8x128xf32>
      %175 = arith.mulf %174, %115 : vector<8x128xf32>
      %176 = arith.addf %173, %175 : vector<8x128xf32>
      %177 = vector.broadcast %11 : f32 to vector<8x128xf32>
      %178 = arith.mulf %177, %119 : vector<8x128xf32>
      %179 = vector.broadcast %43 : f32 to vector<8x128xf32>
      %180 = arith.mulf %179, %120 : vector<8x128xf32>
      %181 = arith.subf %178, %180 : vector<8x128xf32>
      %182 = vector.broadcast %43 : f32 to vector<8x128xf32>
      %183 = arith.mulf %182, %119 : vector<8x128xf32>
      %184 = vector.broadcast %11 : f32 to vector<8x128xf32>
      %185 = arith.mulf %184, %120 : vector<8x128xf32>
      %186 = arith.addf %183, %185 : vector<8x128xf32>
      %187 = arith.addf %171, %181 : vector<8x128xf32>
      %188 = arith.addf %176, %186 : vector<8x128xf32>
      %189 = vector.broadcast %13 : f32 to vector<8x128xf32>
      %190 = arith.mulf %189, %119 : vector<8x128xf32>
      %191 = vector.broadcast %45 : f32 to vector<8x128xf32>
      %192 = arith.mulf %191, %120 : vector<8x128xf32>
      %193 = arith.addf %190, %192 : vector<8x128xf32>
      %194 = vector.broadcast %45 : f32 to vector<8x128xf32>
      %195 = arith.mulf %194, %119 : vector<8x128xf32>
      %196 = vector.broadcast %13 : f32 to vector<8x128xf32>
      %197 = arith.mulf %196, %120 : vector<8x128xf32>
      %198 = arith.subf %195, %197 : vector<8x128xf32>
      %199 = arith.addf %187, %193 : vector<8x128xf32>
      %200 = arith.addf %188, %198 : vector<8x128xf32>
      %201 = vector.broadcast %15 : f32 to vector<8x128xf32>
      %202 = arith.mulf %201, %114 : vector<8x128xf32>
      %203 = vector.broadcast %47 : f32 to vector<8x128xf32>
      %204 = arith.mulf %203, %115 : vector<8x128xf32>
      %205 = arith.addf %202, %204 : vector<8x128xf32>
      %206 = vector.broadcast %47 : f32 to vector<8x128xf32>
      %207 = arith.mulf %206, %114 : vector<8x128xf32>
      %208 = vector.broadcast %15 : f32 to vector<8x128xf32>
      %209 = arith.mulf %208, %115 : vector<8x128xf32>
      %210 = arith.subf %207, %209 : vector<8x128xf32>
      %211 = arith.addf %199, %205 : vector<8x128xf32>
      %212 = arith.addf %200, %210 : vector<8x128xf32>
      %213 = vector.broadcast %17 : f32 to vector<8x128xf32>
      %214 = arith.mulf %213, %114 : vector<8x128xf32>
      %215 = vector.broadcast %49 : f32 to vector<8x128xf32>
      %216 = arith.mulf %215, %115 : vector<8x128xf32>
      %217 = arith.subf %214, %216 : vector<8x128xf32>
      %218 = vector.broadcast %49 : f32 to vector<8x128xf32>
      %219 = arith.mulf %218, %114 : vector<8x128xf32>
      %220 = vector.broadcast %17 : f32 to vector<8x128xf32>
      %221 = arith.mulf %220, %115 : vector<8x128xf32>
      %222 = arith.addf %219, %221 : vector<8x128xf32>
      %223 = vector.broadcast %19 : f32 to vector<8x128xf32>
      %224 = arith.mulf %223, %119 : vector<8x128xf32>
      %225 = vector.broadcast %51 : f32 to vector<8x128xf32>
      %226 = arith.mulf %225, %120 : vector<8x128xf32>
      %227 = arith.subf %224, %226 : vector<8x128xf32>
      %228 = vector.broadcast %51 : f32 to vector<8x128xf32>
      %229 = arith.mulf %228, %119 : vector<8x128xf32>
      %230 = vector.broadcast %19 : f32 to vector<8x128xf32>
      %231 = arith.mulf %230, %120 : vector<8x128xf32>
      %232 = arith.addf %229, %231 : vector<8x128xf32>
      %233 = arith.addf %217, %227 : vector<8x128xf32>
      %234 = arith.addf %222, %232 : vector<8x128xf32>
      %235 = vector.broadcast %21 : f32 to vector<8x128xf32>
      %236 = arith.mulf %235, %119 : vector<8x128xf32>
      %237 = vector.broadcast %53 : f32 to vector<8x128xf32>
      %238 = arith.mulf %237, %120 : vector<8x128xf32>
      %239 = arith.addf %236, %238 : vector<8x128xf32>
      %240 = vector.broadcast %53 : f32 to vector<8x128xf32>
      %241 = arith.mulf %240, %119 : vector<8x128xf32>
      %242 = vector.broadcast %21 : f32 to vector<8x128xf32>
      %243 = arith.mulf %242, %120 : vector<8x128xf32>
      %244 = arith.subf %241, %243 : vector<8x128xf32>
      %245 = arith.addf %233, %239 : vector<8x128xf32>
      %246 = arith.addf %234, %244 : vector<8x128xf32>
      %247 = vector.broadcast %23 : f32 to vector<8x128xf32>
      %248 = arith.mulf %247, %114 : vector<8x128xf32>
      %249 = vector.broadcast %55 : f32 to vector<8x128xf32>
      %250 = arith.mulf %249, %115 : vector<8x128xf32>
      %251 = arith.addf %248, %250 : vector<8x128xf32>
      %252 = vector.broadcast %55 : f32 to vector<8x128xf32>
      %253 = arith.mulf %252, %114 : vector<8x128xf32>
      %254 = vector.broadcast %23 : f32 to vector<8x128xf32>
      %255 = arith.mulf %254, %115 : vector<8x128xf32>
      %256 = arith.subf %253, %255 : vector<8x128xf32>
      %257 = arith.addf %245, %251 : vector<8x128xf32>
      %258 = arith.addf %246, %256 : vector<8x128xf32>
      %259 = vector.broadcast %25 : f32 to vector<8x128xf32>
      %260 = arith.mulf %259, %114 : vector<8x128xf32>
      %261 = vector.broadcast %57 : f32 to vector<8x128xf32>
      %262 = arith.mulf %261, %115 : vector<8x128xf32>
      %263 = arith.subf %260, %262 : vector<8x128xf32>
      %264 = vector.broadcast %57 : f32 to vector<8x128xf32>
      %265 = arith.mulf %264, %114 : vector<8x128xf32>
      %266 = vector.broadcast %25 : f32 to vector<8x128xf32>
      %267 = arith.mulf %266, %115 : vector<8x128xf32>
      %268 = arith.addf %265, %267 : vector<8x128xf32>
      %269 = vector.broadcast %27 : f32 to vector<8x128xf32>
      %270 = arith.mulf %269, %119 : vector<8x128xf32>
      %271 = vector.broadcast %59 : f32 to vector<8x128xf32>
      %272 = arith.mulf %271, %120 : vector<8x128xf32>
      %273 = arith.subf %270, %272 : vector<8x128xf32>
      %274 = vector.broadcast %59 : f32 to vector<8x128xf32>
      %275 = arith.mulf %274, %119 : vector<8x128xf32>
      %276 = vector.broadcast %27 : f32 to vector<8x128xf32>
      %277 = arith.mulf %276, %120 : vector<8x128xf32>
      %278 = arith.addf %275, %277 : vector<8x128xf32>
      %279 = arith.addf %263, %273 : vector<8x128xf32>
      %280 = arith.addf %268, %278 : vector<8x128xf32>
      %281 = vector.broadcast %29 : f32 to vector<8x128xf32>
      %282 = arith.mulf %281, %119 : vector<8x128xf32>
      %283 = vector.broadcast %61 : f32 to vector<8x128xf32>
      %284 = arith.mulf %283, %120 : vector<8x128xf32>
      %285 = arith.addf %282, %284 : vector<8x128xf32>
      %286 = vector.broadcast %61 : f32 to vector<8x128xf32>
      %287 = arith.mulf %286, %119 : vector<8x128xf32>
      %288 = vector.broadcast %29 : f32 to vector<8x128xf32>
      %289 = arith.mulf %288, %120 : vector<8x128xf32>
      %290 = arith.subf %287, %289 : vector<8x128xf32>
      %291 = arith.addf %279, %285 : vector<8x128xf32>
      %292 = arith.addf %280, %290 : vector<8x128xf32>
      %293 = vector.broadcast %31 : f32 to vector<8x128xf32>
      %294 = arith.mulf %293, %114 : vector<8x128xf32>
      %295 = vector.broadcast %63 : f32 to vector<8x128xf32>
      %296 = arith.mulf %295, %115 : vector<8x128xf32>
      %297 = arith.addf %294, %296 : vector<8x128xf32>
      %298 = vector.broadcast %63 : f32 to vector<8x128xf32>
      %299 = arith.mulf %298, %114 : vector<8x128xf32>
      %300 = vector.broadcast %31 : f32 to vector<8x128xf32>
      %301 = arith.mulf %300, %115 : vector<8x128xf32>
      %302 = arith.subf %299, %301 : vector<8x128xf32>
      %303 = arith.addf %291, %297 : vector<8x128xf32>
      %304 = arith.addf %292, %302 : vector<8x128xf32>
      %305 = arith.mulf %114, %165 : vector<8x128xf32>
      %306 = arith.mulf %115, %166 : vector<8x128xf32>
      %307 = arith.subf %305, %306 : vector<8x128xf32>
      %308 = arith.mulf %114, %166 : vector<8x128xf32>
      %309 = arith.mulf %115, %165 : vector<8x128xf32>
      %310 = arith.addf %308, %309 : vector<8x128xf32>
      %311 = arith.mulf %119, %211 : vector<8x128xf32>
      %312 = arith.mulf %120, %212 : vector<8x128xf32>
      %313 = arith.subf %311, %312 : vector<8x128xf32>
      %314 = arith.mulf %119, %212 : vector<8x128xf32>
      %315 = arith.mulf %120, %211 : vector<8x128xf32>
      %316 = arith.addf %314, %315 : vector<8x128xf32>
      %317 = arith.mulf %119, %257 : vector<8x128xf32>
      %318 = arith.mulf %120, %258 : vector<8x128xf32>
      %319 = arith.addf %317, %318 : vector<8x128xf32>
      %320 = arith.mulf %119, %258 : vector<8x128xf32>
      %321 = arith.mulf %120, %257 : vector<8x128xf32>
      %322 = arith.subf %320, %321 : vector<8x128xf32>
      %323 = arith.mulf %114, %303 : vector<8x128xf32>
      %324 = arith.mulf %115, %304 : vector<8x128xf32>
      %325 = arith.addf %323, %324 : vector<8x128xf32>
      %326 = arith.mulf %114, %304 : vector<8x128xf32>
      %327 = arith.mulf %115, %303 : vector<8x128xf32>
      %328 = arith.subf %326, %327 : vector<8x128xf32>
      %329 = arith.mulf %307, %307 : vector<8x128xf32>
      %330 = arith.mulf %310, %310 : vector<8x128xf32>
      %331 = arith.addf %329, %330 : vector<8x128xf32>
      %332 = vector.broadcast %65 : f32 to vector<8x128xf32>
      %333 = arith.mulf %332, %331 : vector<8x128xf32>
      %334 = arith.mulf %313, %313 : vector<8x128xf32>
      %335 = arith.mulf %316, %316 : vector<8x128xf32>
      %336 = arith.addf %334, %335 : vector<8x128xf32>
      %337 = vector.broadcast %73 : f32 to vector<8x128xf32>
      %338 = arith.mulf %337, %336 : vector<8x128xf32>
      %339 = arith.addf %333, %338 : vector<8x128xf32>
      %340 = arith.mulf %319, %319 : vector<8x128xf32>
      %341 = arith.mulf %322, %322 : vector<8x128xf32>
      %342 = arith.addf %340, %341 : vector<8x128xf32>
      %343 = vector.broadcast %79 : f32 to vector<8x128xf32>
      %344 = arith.mulf %343, %342 : vector<8x128xf32>
      %345 = arith.addf %339, %344 : vector<8x128xf32>
      %346 = arith.mulf %325, %325 : vector<8x128xf32>
      %347 = arith.mulf %328, %328 : vector<8x128xf32>
      %348 = arith.addf %346, %347 : vector<8x128xf32>
      %349 = vector.broadcast %83 : f32 to vector<8x128xf32>
      %350 = arith.mulf %349, %348 : vector<8x128xf32>
      %351 = arith.addf %345, %350 : vector<8x128xf32>
      %352 = arith.mulf %307, %313 : vector<8x128xf32>
      %353 = arith.mulf %310, %316 : vector<8x128xf32>
      %354 = arith.addf %352, %353 : vector<8x128xf32>
      %355 = arith.mulf %307, %316 : vector<8x128xf32>
      %356 = arith.mulf %310, %313 : vector<8x128xf32>
      %357 = arith.subf %355, %356 : vector<8x128xf32>
      %358 = vector.broadcast %67 : f32 to vector<8x128xf32>
      %359 = arith.mulf %358, %354 : vector<8x128xf32>
      %360 = vector.broadcast %85 : f32 to vector<8x128xf32>
      %361 = arith.mulf %360, %357 : vector<8x128xf32>
      %362 = arith.subf %359, %361 : vector<8x128xf32>
      %363 = arith.addf %351, %362 : vector<8x128xf32>
      %364 = arith.mulf %307, %319 : vector<8x128xf32>
      %365 = arith.mulf %310, %322 : vector<8x128xf32>
      %366 = arith.addf %364, %365 : vector<8x128xf32>
      %367 = arith.mulf %307, %322 : vector<8x128xf32>
      %368 = arith.mulf %310, %319 : vector<8x128xf32>
      %369 = arith.subf %367, %368 : vector<8x128xf32>
      %370 = vector.broadcast %69 : f32 to vector<8x128xf32>
      %371 = arith.mulf %370, %366 : vector<8x128xf32>
      %372 = vector.broadcast %87 : f32 to vector<8x128xf32>
      %373 = arith.mulf %372, %369 : vector<8x128xf32>
      %374 = arith.subf %371, %373 : vector<8x128xf32>
      %375 = arith.addf %363, %374 : vector<8x128xf32>
      %376 = arith.mulf %307, %325 : vector<8x128xf32>
      %377 = arith.mulf %310, %328 : vector<8x128xf32>
      %378 = arith.addf %376, %377 : vector<8x128xf32>
      %379 = arith.mulf %307, %328 : vector<8x128xf32>
      %380 = arith.mulf %310, %325 : vector<8x128xf32>
      %381 = arith.subf %379, %380 : vector<8x128xf32>
      %382 = vector.broadcast %71 : f32 to vector<8x128xf32>
      %383 = arith.mulf %382, %378 : vector<8x128xf32>
      %384 = vector.broadcast %89 : f32 to vector<8x128xf32>
      %385 = arith.mulf %384, %381 : vector<8x128xf32>
      %386 = arith.subf %383, %385 : vector<8x128xf32>
      %387 = arith.addf %375, %386 : vector<8x128xf32>
      %388 = arith.mulf %313, %319 : vector<8x128xf32>
      %389 = arith.mulf %316, %322 : vector<8x128xf32>
      %390 = arith.addf %388, %389 : vector<8x128xf32>
      %391 = arith.mulf %313, %322 : vector<8x128xf32>
      %392 = arith.mulf %316, %319 : vector<8x128xf32>
      %393 = arith.subf %391, %392 : vector<8x128xf32>
      %394 = vector.broadcast %75 : f32 to vector<8x128xf32>
      %395 = arith.mulf %394, %390 : vector<8x128xf32>
      %396 = vector.broadcast %91 : f32 to vector<8x128xf32>
      %397 = arith.mulf %396, %393 : vector<8x128xf32>
      %398 = arith.subf %395, %397 : vector<8x128xf32>
      %399 = arith.addf %387, %398 : vector<8x128xf32>
      %400 = arith.mulf %313, %325 : vector<8x128xf32>
      %401 = arith.mulf %316, %328 : vector<8x128xf32>
      %402 = arith.addf %400, %401 : vector<8x128xf32>
      %403 = arith.mulf %313, %328 : vector<8x128xf32>
      %404 = arith.mulf %316, %325 : vector<8x128xf32>
      %405 = arith.subf %403, %404 : vector<8x128xf32>
      %406 = vector.broadcast %77 : f32 to vector<8x128xf32>
      %407 = arith.mulf %406, %402 : vector<8x128xf32>
      %408 = vector.broadcast %93 : f32 to vector<8x128xf32>
      %409 = arith.mulf %408, %405 : vector<8x128xf32>
      %410 = arith.subf %407, %409 : vector<8x128xf32>
      %411 = arith.addf %399, %410 : vector<8x128xf32>
      %412 = arith.mulf %319, %325 : vector<8x128xf32>
      %413 = arith.mulf %322, %328 : vector<8x128xf32>
      %414 = arith.addf %412, %413 : vector<8x128xf32>
      %415 = arith.mulf %319, %328 : vector<8x128xf32>
      %416 = arith.mulf %322, %325 : vector<8x128xf32>
      %417 = arith.subf %415, %416 : vector<8x128xf32>
      %418 = vector.broadcast %81 : f32 to vector<8x128xf32>
      %419 = arith.mulf %418, %414 : vector<8x128xf32>
      %420 = vector.broadcast %95 : f32 to vector<8x128xf32>
      %421 = arith.mulf %420, %417 : vector<8x128xf32>
      %422 = arith.subf %419, %421 : vector<8x128xf32>
      %423 = arith.addf %411, %422 : vector<8x128xf32>
      %c0_13 = arith.constant 0 : index
      %c0_14 = arith.constant 0 : index
      %424 = arith.index_cast %98 : i32 to index
      %c0_15 = arith.constant 0 : index
      %425 = vector.load %arg4[%c0_13, %c0_14, %424, %c0_15] : memref<1x1x32x128xf32, #tpu.memory_space<vmem>>, vector<1x1x8x128xf32>
      %426 = vector.shape_cast %425 : vector<1x1x8x128xf32> to vector<8x128xf32>
      %427 = vector.shape_cast %423 : vector<8x128xf32> to vector<1x1x8x128xf32>
      tpu.vector_store %arg4[%c0_13, %c0_14, %424, %c0_15], %427 {strides = array<i32>} : memref<1x1x32x128xf32, #tpu.memory_space<vmem>>, vector<1x1x8x128xf32>,
    }
    %c4_i32_0 = arith.constant 4 : i32
    return
  }
  func.func @transform_0(%arg0: i32, %arg1: i32, %arg2: memref<2x64xf32, #tpu.memory_space<smem>>) -> (i32, i32, i32, i32, i32) {
    %c0_i32 = arith.constant 0 : i32
    %c0_i32_0 = arith.constant 0 : i32
    %c0_i32_1 = arith.constant 0 : i32
    %c0_i32_2 = arith.constant 0 : i32
    return %arg0, %c0_i32, %arg1, %c0_i32_0, %c0_i32_1 : i32, i32, i32, i32, i32
  }
  func.func @transform_1(%arg0: i32, %arg1: i32, %arg2: memref<2x64xf32, #tpu.memory_space<smem>>) -> (i32, i32, i32, i32) {
    %c0_i32 = arith.constant 0 : i32
    %c0_i32_0 = arith.constant 0 : i32
    %c0_i32_1 = arith.constant 0 : i32
    return %arg0, %arg1, %c0_i32, %c0_i32_0 : i32, i32, i32, i32
  }
}

</mosaic_0001>

<bundles_post_ra>
// kernel: tpu_custom_call.1
= control target key start
LH: loop header
LB: loop body
LE: loop exit
PB: predicated region body
PF: predicated region fallthrough
CT: control target
= control target key end

     0   :  { %s1336_s9 = smov [#allocation3]   ;;  %s2147_s0 = inlined_call_operand.hbm [shape: f32[2,64], index: 0, kind: input, shape index: {}]   ;;  %s2148_s1 = inlined_call_operand.hbm [shape: f32[2,2,1,32,128], index: 1, kind: input, shape index: {}]   ;;  %s2149_s2 = inlined_call_operand.hbm [shape: f32[2,1,32,128], index: 2, kind: output, shape index: {}]  }
   0x1   :  { %2216 = sst [smem:[#allocation67_spill]] %s2148_s1 }
   0x2   :  { %2217 = sst [smem:[#allocation68_spill]] %s2149_s2 }
   0x3   :  { %8 = dma.hbm_to_smem %s2147_s0, 32, %s1336_s9, [#allocation2] }
   0x4   :  { %1298 = dma.done.wait [#allocation2], 32 }
   0x5   :  { %1299 = vsyncadd [#allocation2], 4294967264 }
   0x6   :  { %10 = sfence }
   0x7   :  { %11 = vsyncpa [#allocation5], 0 }
   0x8   :  { %13 = vsyncpa [#allocation5 + $0x1], 0 }
   0x9   :  { %14 = vsyncpa [#allocation6], 0 }
   0xa   :  { %16 = vsyncpa [#allocation6 + $0x1], 0  ;;  %s1367_s12 = smov 0   ;;  %s1369_s13 = smov 0  }
   0xb   :  { %s1371_s14 = smov 0   ;;  %s1373_s15 = smov 0  }
   0xc   :  { %s1375_s16 = smov 0   ;;  %s1377_s17 = smov 0  }
   0xd LB: > { %2218 = sst [smem:[#allocation11_spill]] %s1310_s12  ;;  %s1074_s0 = sadd.s32 4294967295, %s1330_s17   ;;  %s1330_s17 = sphi %s1377_s17, %s22_s17   ;;  %s1326_s16 = sphi %s1375_s16, %s2365_s16   ;;  %s1322_s15 = sphi %s1373_s15, %s2364_s15   ;;  %s1318_s14 = sphi %s1371_s14, %s2363_s14   ;;  %s1314_s13 = sphi %s1369_s13, %s2362_s13   ;;  %s1310_s12 = sphi %s1367_s12, %s2361_s12  }
   0xe   : > { %2219 = sst [smem:[#allocation12_spill]] %s1314_s13  ;;  %s1075_s18 = sadd.s32 4294967294, %s1330_s17  }
   0xf   : > { %2220 = sst [smem:[#allocation13_spill]] %s1318_s14  ;;  %s34_s19 = sadd.s32 1, %s1326_s16 }
  0x10   : > { %2221 = sst [smem:[#allocation14_spill]] %s1322_s15  ;;  %s43_s20 = sadd.s32 1, %s1318_s14 }
  0x11   : > { %2222 = sst [smem:[#allocation15_spill]] %s1326_s16  ;;  %p36_p0 = scmp.ge.s32.totalorder %s34_s19, 2 }
  0x12   : > { %2223 = sst [smem:[#allocation16_spill]] %s1330_s17  ;;  %p50_p1 = scmp.ne.s32.totalorder %s1318_s14, %s1314_s13 }
  0x13   : > { %p51_p2 = scmp.eq.s32.totalorder %s1330_s17, 0  ;;  %p56_p3 = scmp.ne.s32.totalorder %s1314_s13, %s1310_s12 }
  0x14   : > { %s2367_s19 = smov (%p36_p0, %s34_s19), 0  ;;  %p57_p5 = scmp.eq.s32.totalorder %s1074_s0, 0 }
  0x15   : > { %2224 = sst [smem:[#allocation17_spill]] %s2367_s19  ;;  %p1408_p4 = por %p51_p2, %p50_p1 }
  0x16   : > { %s38_s22 = ssub.s32 %s1326_s16, %s2367_s19  ;;  %p82_p6 = scmp.eq.s32.totalorder %s1074_s0, 1 }
  0x17   : > { %p41_p7 = scmp.eq.s32.totalorder %s38_s22, 0  ;;  %p1414_p8 = por %p57_p5, %p56_p3 }
  0x18   : > { %p1418_p9 = por %p82_p6, %p50_p1  ;;  %p88_p10 = scmp.eq.s32.totalorder %s1075_s18, 1 }
  0x19   : > { %s1423_s25 = scalar_select %p41_p7, %s1318_s14, %s43_s20  }
  0x1a   : > { %s2227_s24 = scalar_select %p1418_p9, 1, 0 }
  0x1b   : > { %2229 = sst [smem:[#allocation19_spill]] %s1423_s25  ;;  %p1425_p11 = por %p88_p10, %p56_p3 }
  0x1c   : > { %2228 = sst [smem:[#allocation18_spill]] %s2227_s24  ;;  %p1131_p13 = scmp.lt.s32.totalorder %s1330_s17, 2 }
  0x1d   : > { %s2230_s26 = scalar_select %p1425_p11, 1, 0 }
  0x1e   : > { %s108_s27 = sand.u32 1, %s1318_s14   ;;  %s1109_s29 = sshll.u32 %s1326_s16, 10 }
  0x1f   : > { %2231 = sst [smem:[#allocation20_spill]] %s2230_s26  ;;  %s1078_s28 = sshll.u32 %s108_s27, 6 }
  0x20   : > { %s2232_s1 = sld [smem:[#allocation67_spill]]  ;;  %s112_s5 = scalar_lea.vmem [#allocation4], %s1078_s28 }
  0x21   : > { %s121_s6 = sshll.u32 %s112_s5, 4  ;;  %p1438_p0 = pnand %p1131_p13, %p1408_p4  ;;  %s122_s6 = int_to_ptr.vmem [resolvable:$true] %s121_s6 }
  0x22   : > { %p1081_p1 = scmp.ge.s32.totalorder %s1330_s17, 1  ;;  %s109_s8 = scalar_lea.sflag [#allocation5], %s108_s27 }
  0x23   : > { %p1218_p2 = pneg %p1438_p0  ;;  %s1229_s9 = scalar_lea.vmem %s122_s6, 1024 }
  0x24   : > { %p1230_p3 = scmp.ne.s32.totalorder %s122_s6, %s1229_s9  ;;  %s1337_s10 = smov [#allocation4]  }
  0x25   : > { %s1234_s11 = sshll.u32 %s1337_s10, 4  ;;  %s1235_s11 = int_to_ptr.vmem [resolvable:$false] %s1234_s11 }
  0x26   : > { %s120_s4 = scalar_lea.hbm %s2232_s1, %s1109_s29  ;;  %p1232_p5 = pnand %p1230_p3, %p1218_p2 }
  0x27   : > { %s1236_s0 = scalar_lea.vmem %s1235_s11, 2048  ;;  %p1237_p7 = scmp.lt.s32.totalorder %s122_s6, %s1235_s11 }
  0x28   : > { %p1233_p6 = pneg %p1232_p5  ;;  %p1238_p10 = scmp.lt.s32.totalorder %s1236_s0, %s1229_s9 }
  0x2a   : > { %p1239_p12 = por %p1238_p10, %p1237_p7 }
  0x2c   : > { %p1240_p4 = pnand %p1239_p12, %p1233_p6 }
  0x2e   : > { %1243 = shalt.err (!%p1240_p4)
}
  0x2f   : > { %s1338_s18 = smov 128   ;;  %s1339_s20 = smov 8  }
  0x30   : > { %1126 = dma.hbm_to_vmem [thread:$0]  (!%p1438_p0), %s120_s4, 1024, %s122_s6, %s109_s8, %s1338_s18, %s1338_s18, %s1339_s20  }
  0x31   : > { %p129_p13 = scmp.lt.s32.totalorder %s1330_s17, 3 }
  0x33   : > { %p130_p2 = pnand %p1081_p1, %p129_p13 }
  0x35   : > { %133 = sbr.rel (%p130_p2) target bundleno = 343 (0x157), region = 24 }
  0x3a   : > { %s1451_s21 = sand.u32 1, %s1314_s13  }
  0x3b   : > { %2234 = sst [smem:[#allocation21_spill]] %s1451_s21  ;;  %s1082_s22 = sshll.u32 %s1451_s21, 6 }
  0x3c   : > { %s136_s27 = scalar_lea.sflag [#allocation5], %s1451_s21  ;;  %s1455_s28 = scalar_lea.vmem [#allocation4], %s1082_s22 }
  0x3d   : > { %2235 = sst [smem:[#allocation22_spill]] %s1455_s28 }
  0x3e   : > { %1301 = dma.done.wait (%p1414_p8), %s136_s27, 1024  }
  0x3f   : > { %1303 = vsyncadd (%p1414_p8), %s136_s27, 4294966272  ;;  %s1463_s30 = sshll.u32 %s1322_s15, 7 }
  0x40   : > { %s1466_s3 = sld [smem:[#allocation3 + %s1463_s30]]  ;;  %s160_s4 = sadd.s32 1, %s1463_s30 }
  0x41   : > { %s162_s23 = sadd.s32 2, %s1463_s30  ;;  %s1470_s5 = sld [smem:[#allocation3 + %s160_s4]] }
  0x42   : > { %s164_s6 = sadd.s32 3, %s1463_s30  ;;  %s1473_s7 = sld [smem:[#allocation3 + %s162_s23]] }
  0x43   : > { %s166_s8 = sadd.s32 4, %s1463_s30  ;;  %s1476_s9 = sld [smem:[#allocation3 + %s164_s6]] }
  0x44   : > { %s168_s10 = sadd.s32 5, %s1463_s30  ;;  %s1479_s11 = sld [smem:[#allocation3 + %s166_s8]] }
  0x45   : > { %s170_s0 = sadd.s32 6, %s1463_s30  ;;  %s1482_s18 = sld [smem:[#allocation3 + %s168_s10]] }
  0x46   : > { %2236 = sst [smem:[#allocation23_spill]] %s1466_s3  ;;  %s172_s20 = sadd.s32 7, %s1463_s30 }
  0x47   : > { %2237 = sst [smem:[#allocation24_spill]] %s1470_s5  ;;  %s174_s27 = sadd.s32 8, %s1463_s30 }
  0x48   : > { %2238 = sst [smem:[#allocation25_spill]] %s1473_s7  ;;  %s176_s23 = sadd.s32 9, %s1463_s30 }
  0x49   : > { %2239 = sst [smem:[#allocation26_spill]] %s1476_s9  ;;  %s178_s29 = sadd.s32 10, %s1463_s30 }
  0x4a   : > { %2240 = sst [smem:[#allocation27_spill]] %s1479_s11  ;;  %s180_s1 = sadd.s32 11, %s1463_s30 }
  0x4b   : > { %2241 = sst [smem:[#allocation28_spill]] %s1482_s18  ;;  %s182_s19 = sadd.s32 12, %s1463_s30 }
  0x4c   : > { %s1485_s22 = sld [smem:[#allocation3 + %s170_s0]]  ;;  %s184_s16 = sadd.s32 13, %s1463_s30 }
  0x4d   : > { %s1488_s4 = sld [smem:[#allocation3 + %s172_s20]]  ;;  %s186_s25 = sadd.s32 14, %s1463_s30 }
  0x4e   : > { %s1491_s6 = sld [smem:[#allocation3 + %s174_s27]]  ;;  %s188_s14 = sadd.s32 15, %s1463_s30 }
  0x4f   : > { %s1494_s8 = sld [smem:[#allocation3 + %s176_s23]]  ;;  %s190_s13 = sadd.s32 16, %s1463_s30 }
  0x50   : > { %s1497_s10 = sld [smem:[#allocation3 + %s178_s29]]  ;;  %s192_s17 = sadd.s32 17, %s1463_s30 }
  0x51   : > { %s1500_s0 = sld [smem:[#allocation3 + %s180_s1]]  ;;  %s194_s26 = sadd.s32 18, %s1463_s30 }
  0x52   : > { %2242 = sst [smem:[#allocation29_spill]] %s1485_s22  ;;  %s196_s12 = sadd.s32 19, %s1463_s30 }
  0x53   : > { %2243 = sst [smem:[#allocation30_spill]] %s1488_s4  ;;  %s198_s2 = sadd.s32 20, %s1463_s30 }
  0x54   : > { %2244 = sst [smem:[#allocation31_spill]] %s1491_s6  ;;  %s200_s24 = sadd.s32 21, %s1463_s30 }
  0x55   : > { %2245 = sst [smem:[#allocation32_spill]] %s1494_s8  ;;  %s202_s15 = sadd.s32 22, %s1463_s30 }
  0x56   : > { %2246 = sst [smem:[#allocation33_spill]] %s1497_s10  ;;  %s214_s10 = sadd.s32 28, %s1463_s30 }
  0x57   : > { %2247 = sst [smem:[#allocation34_spill]] %s1500_s0  ;;  %s212_s0 = sadd.s32 27, %s1463_s30 }
  0x58   : > { %s1503_s20 = sld [smem:[#allocation3 + %s182_s19]]  ;;  %s216_s8 = sadd.s32 29, %s1463_s30 }
  0x59   : > { %s1506_s27 = sld [smem:[#allocation3 + %s184_s16]]  ;;  %s218_s6 = sadd.s32 30, %s1463_s30 }
  0x5a   : > { %s1509_s23 = sld [smem:[#allocation3 + %s186_s25]]  ;;  %s246_s4 = sadd.s32 51, %s1463_s30 }
  0x5b   : > { %s1512_s29 = sld [smem:[#allocation3 + %s188_s14]] }
  0x5c   : > { %s1515_s1 = sld [smem:[#allocation3 + %s190_s13]] }
  0x5d   : > { %s1518_s19 = sld [smem:[#allocation3 + %s192_s17]] }
  0x5e   : > { %2248 = sst [smem:[#allocation35_spill]] %s1503_s20  ;;  %s210_s20 = sadd.s32 26, %s1463_s30 }
  0x5f   : > { %2249 = sst [smem:[#allocation36_spill]] %s1506_s27  ;;  %s208_s27 = sadd.s32 25, %s1463_s30 }
  0x60   : > { %2250 = sst [smem:[#allocation37_spill]] %s1509_s23  ;;  %s206_s23 = sadd.s32 24, %s1463_s30 }
  0x61   : > { %2251 = sst [smem:[#allocation38_spill]] %s1512_s29  ;;  %s204_s29 = sadd.s32 23, %s1463_s30 }
  0x62   : > { %2252 = sst [smem:[#allocation39_spill]] %s1515_s1 }
  0x63   : > { %2253 = sst [smem:[#allocation40_spill]] %s1518_s19 }
  0x64   : > { %s1521_s16 = sld [smem:[#allocation3 + %s194_s26]] }
  0x65   : > { %s1524_s25 = sld [smem:[#allocation3 + %s196_s12]] }
  0x66   : > { %s1527_s14 = sld [smem:[#allocation3 + %s198_s2]] }
  0x67   : > { %s1530_s13 = sld [smem:[#allocation3 + %s200_s24]] }
  0x68   : > { %s1533_s17 = sld [smem:[#allocation3 + %s202_s15]] }
  0x69   : > { %s1536_s26 = sld [smem:[#allocation3 + %s204_s29]] }
  0x6a   : > { %2254 = sst [smem:[#allocation41_spill]] %s1521_s16 }
  0x6b   : > { %s1539_s12 = sld [smem:[#allocation3 + %s206_s23]] }
  0x6c   : > { %2255 = sst [smem:[#allocation42_spill]] %s1527_s14 }
  0x6d   : > { %2256 = sst [smem:[#allocation43_spill]] %s1530_s13 }
  0x6e   : > { %2257 = sst [smem:[#allocation44_spill]] %s1533_s17 }
  0x6f   : > { %2258 = sst [smem:[#allocation45_spill]] %s1536_s26 }
  0x70   : > { %s1542_s2 = sld [smem:[#allocation3 + %s208_s27]] }
  0x71   : > { %2259 = sst [smem:[#allocation46_spill]] %s1539_s12  ;;  %s220_s12 = sadd.s32 31, %s1463_s30 }
  0x72   : > { %s1545_s24 = sld [smem:[#allocation3 + %s210_s20]] }
  0x73   : > { %s1548_s15 = sld [smem:[#allocation3 + %s212_s0]] }
  0x74   : > { %s1551_s29 = sld [smem:[#allocation3 + %s214_s10]] }
  0x75   : > { %s1554_s23 = sld [smem:[#allocation3 + %s216_s8]] }
  0x76   : > { %2260 = sst [smem:[#allocation47_spill]] %s1542_s2  ;;  %s222_s2 = sadd.s32 32, %s1463_s30 }
  0x77   : > { %s1557_s27 = sld [smem:[#allocation3 + %s218_s6]] }
  0x78   : > { %2261 = sst [smem:[#allocation48_spill]] %s1545_s24  ;;  %s224_s24 = sadd.s32 33, %s1463_s30 }
  0x79   : > { %2262 = sst [smem:[#allocation49_spill]] %s1548_s15  ;;  %s226_s15 = sadd.s32 34, %s1463_s30 }
  0x7a   : > { %2263 = sst [smem:[#allocation50_spill]] %s1551_s29  ;;  %s228_s29 = sadd.s32 35, %s1463_s30 }
  0x7b   : > { %2264 = sst [smem:[#allocation51_spill]] %s1554_s23  ;;  %s230_s23 = sadd.s32 37, %s1463_s30 }
  0x7c   : > { %s1560_s20 = sld [smem:[#allocation3 + %s220_s12]] }
  0x7d   : > { %2265 = sst [smem:[#allocation52_spill]] %s1557_s27  ;;  %s232_s27 = sadd.s32 38, %s1463_s30 }
  0x7e   : > { %s1563_s0 = sld [smem:[#allocation3 + %s222_s2]] }
  0x7f   : > { %s1566_s10 = sld [smem:[#allocation3 + %s224_s24]] }
  0x80   : > { %s1569_s8 = sld [smem:[#allocation3 + %s226_s15]]  ;;  %s240_s15 = sadd.s32 47, %s1463_s30 }
  0x81   : > { %s1572_s6 = sld [smem:[#allocation3 + %s228_s29]]  ;;  %s242_s29 = sadd.s32 49, %s1463_s30 }
  0x82   : > { %2266 = sst [smem:[#allocation53_spill]] %s1560_s20  ;;  %s234_s20 = sadd.s32 39, %s1463_s30 }
  0x83   : > { %s1575_s12 = sld [smem:[#allocation3 + %s230_s23]]  ;;  %s244_s23 = sadd.s32 50, %s1463_s30 }
  0x84   : > { %2267 = sst [smem:[#allocation54_spill]] %s1563_s0  ;;  %s236_s0 = sadd.s32 42, %s1463_s30 }
  0x85   : > { %2268 = sst [smem:[#allocation55_spill]] %s1566_s10  ;;  %s238_s10 = sadd.s32 43, %s1463_s30 }
  0x86   : > { %2269 = sst [smem:[#allocation56_spill]] %s1569_s8 }
  0x87   : > { %2270 = sst [smem:[#allocation57_spill]] %s1572_s6 }
  0x88   : > { %s1578_s2 = sld [smem:[#allocation3 + %s232_s27]] }
  0x89   : > { %2271 = sst [smem:[#allocation58_spill]] %s1575_s12 }
  0x8a   : > { %s1581_s24 = sld [smem:[#allocation3 + %s234_s20]]  ;;  %s250_s20 = sadd.s32 55, %s1463_s30 }
  0x8b   : > { %s1584_s26 = sld [smem:[#allocation3 + %s236_s0]]  ;;  %s252_s0 = sadd.s32 59, %s1463_s30 }
  0x8c   : > { %s1587_s8 = sld [smem:[#allocation3 + %s238_s10]] }
  0x8d   : > { %s1590_s6 = sld [smem:[#allocation3 + %s240_s15]] }
  0x8e   : > { %2272 = sst [smem:[#allocation59_spill]] %s1578_s2  ;;  %s248_s2 = sadd.s32 54, %s1463_s30 }
  0x8f   : > { %s1593_s12 = sld [smem:[#allocation3 + %s242_s29]] }
  0x90   : > { %2273 = sst [smem:[#allocation60_spill]] %s1581_s24 }
  0x91   : > { %2274 = sst [smem:[#allocation61_spill]] %s1584_s26 }
  0x92   : > { %2275 = sst [smem:[#allocation62_spill]] %s1587_s8  ;;  %s2278_s8 = sshll.u32 %s1451_s21, 5 }
  0x93   : > { %2276 = sst [smem:[#allocation63_spill]] %s1590_s6  ;;  %s1611_s15 = scalar_lea.vmem [#allocation7], %s2278_s8 }
  0x94   : > { %s1596_s27 = sld [smem:[#allocation3 + %s244_s23]]  ;;  %s1613_s6 = smov 0  }
  0x95   : > { %s1599_s17 = sld [smem:[#allocation3 + %s246_s4]] }
  0x96   : > { %s1602_s24 = sld [smem:[#allocation3 + %s248_s2]] }
  0x97   : > { %s1605_s26 = sld [smem:[#allocation3 + %s250_s20]] }
  0x98   : > { %s1607_s10 = sld [smem:[#allocation3 + %s252_s0]] }
  0x99   : > { %2279 = sst [smem:[#allocation65_spill]] %s1611_s15 }
  0x9e   : > { %2277 = sst [smem:[#allocation64_spill]] %s1607_s10 }
  0x9f LB: >> { %s2280_s5 = sld [smem:[#allocation24_spill]]  ;;  %s2191_s4 = sshll.u32 %s1334_s6, 3  ;;  %v1340_v30 = vmov 683565275   ;;  %v1341_v32 = vmov 2475754826   ;;  %s1334_s6 = sphi %s1613_s6, %s259_s6  }
  0xa0   : >> { %s2281_s14 = sld [smem:[#allocation42_spill]]  ;;  %v1342_v34 = vmov 2131351028   ;;  %v1343_v36 = vmov 2102212464  }
  0xa1   : >> { %s2282_s11 = sld [smem:[#allocation27_spill]]  ;;  %v1344_v38 = vmov 920167782   ;;  %v1345_v46 = vmov 1326507024  }
  0xa2   : >> { %s2283_s9 = sld [smem:[#allocation26_spill]] }
  0xa3   : >> { %s2284_s3 = sld [smem:[#allocation23_spill]] }
  0xa4   : >> { %s2285_s1 = sld [smem:[#allocation39_spill]] }
  0xa5   : >> { %s2286_s28 = sld [smem:[#allocation22_spill]] }
  0xa6   : >> { %2287 = sst [smem:[#allocation66_spill]] %s1334_s6 }
  0xa7   : >> { %s2288_s19 = sld [smem:[#allocation40_spill]] }
  0xa8   : >> { %s2289_s7 = sld [smem:[#allocation25_spill]] }
  0xa9   : >> { %s2290_s16 = sld [smem:[#allocation41_spill]] }
  0xaa   : >> { %s2291_s18 = sld [smem:[#allocation28_spill]] }
  0xab   : >> { %s261_s30 = scalar_lea.vmem %s2286_s28, %s2191_s4  ;;  %s2294_s13 = sld [smem:[#allocation43_spill]] }
  0xac   : >> { %v262_v0 = vld [vmem:[%s261_s30] sm:$0xff]  ;;  %s2295_s22 = sld [smem:[#allocation29_spill]] }
  0xad   : >> { %v1087_v1 = vld [vmem:[%s261_s30 + $0x20] sm:$0xff]  ;;  %v263_v2 = vmul.f32 0.5, %v262_v0  ;;  %s2296_s8 = sld [smem:[#allocation44_spill]] }
  0xae   : >> { %v267_v3 = vmul.f32 0.5, %v1087_v1  ;;  %s2297_s2 = sld [smem:[#allocation30_spill]] }
  0xaf   : >> { %v268_v4 = vsub.f32 0.0, %v263_v2  ;;  %s2298_s29 = sld [smem:[#allocation45_spill]] }
  0xb0   : >> { %v269_v5 = vsub.f32 0.0, %v267_v3  ;;  %s2299_s23 = sld [smem:[#allocation31_spill]] }
  0xb1   : >> { %v1624_v7 = vadd.f32 %v268_v4, %v267_v3  ;;  %s2300_s20 = sld [smem:[#allocation46_spill]] }
  0xb2   : >> { %v1622_v6 = vadd.f32 %v269_v5, %v268_v4  ;;  %s2301_s0 = sld [smem:[#allocation32_spill]] }
  0xb3   : >> { %v479_v10 = vand.u32 2147483647, %v1624_v7  ;;  %v482_v11 = vand.u32 2139095040, %v1624_v7  ;;  %s2302_s30 = sld [smem:[#allocation47_spill]] }
  0xb4   : >> { %v271_v8 = vand.u32 2147483647, %v1622_v6  ;;  %v274_v9 = vand.u32 2139095040, %v1622_v6  ;;  %vm273_vm14 = vcmp.lt.s32.totalorder %v1622_v6, 0  ;;  %s2303_s4 = sld [smem:[#allocation33_spill]] }
  0xb5   : >> { %v483_v14 = vshrl.u32 %v482_v11, 23  ;;  %v486_v15 = vand.u32 8388607, %v479_v10  ;;  %s2304_s28 = sld [smem:[#allocation48_spill]] }
  0xb6   : >> { %v275_v12 = vshrl.u32 %v274_v9, 23  ;;  %v278_v13 = vand.u32 8388607, %v271_v8  ;;  %vm1696_vm15 = vcmp.le.f32.partialorder %v271_v8, 0.7853982  ;;  %v726_v8 = vstv %s2281_s14  ;;  %s2305_s21 = sld [smem:[#allocation34_spill]] }
  0xb7   : >> { %v1096_v17 = vadd.s32 4294967169, %v483_v14  ;;  %v487_v20 = vor.u32 8388608, %v486_v15  ;;  %s2306_s15 = sld [smem:[#allocation49_spill]] }
  0xb8   : >> { %v1088_v16 = vadd.s32 4294967169, %v275_v12  ;;  %v279_v19 = vor.u32 8388608, %v278_v13  ;;  %s2307_s6 = sld [smem:[#allocation35_spill]] }
  0xb9   : >> { %v489_v21 = vadd.s32 1, %v1096_v17  ;;  %v1636_v28 = vshll.u32 %v487_v20, 8  ;;  %s2313_s10 = sld [smem:[#allocation38_spill]] }
  0xba   : >> { %v281_v18 = vadd.s32 1, %v1088_v16  ;;  %v1634_v26 = vshll.u32 %v279_v19, 8 }
  0xbb   : >> { %vm490_vm1 = vcmp.gt.s32.totalorder %v489_v21, 0 }
  0xbc   : >> { %vm282_vm0 = vcmp.gt.s32.totalorder %v281_v18, 0  ;;  %v491_v25 = vsel %vm490_vm1, %v489_v21, 0  ;;  %vm480_vm1 = vcmp.le.f32.partialorder %v479_v10, 0.7853982 }
  0xbd   : >> { %v283_v22 = vsel %vm282_vm0, %v281_v18, 0  ;;  %v493_v27 = vand.u32 31, %v491_v25  ;;  %v1638_v40 = vshrl.u32 %v491_v25, 5  ;;  %vm481_vm0 = vcmp.lt.s32.totalorder %v1624_v7, 0 }
  0xbe   : >> { %v284_v23 = vshrl.u32 %v283_v22, 5  ;;  %v285_v24 = vand.u32 31, %v283_v22 }
  0xbf   : >> { %v494_v51 = vsub.s32 32, %v493_v27  ;;  %v496_v54 = vshll.u32 %v1340_v30, %v493_v27  ;;  %v499_v62 = vshll.u32 %v1341_v32, %v493_v27  ;;  %v502_v17 = vshll.u32 %v1342_v34, %v493_v27 }
  0xc0   : >> { %v286_v29 = vsub.s32 32, %v285_v24  ;;  %v288_v31 = vshll.u32 %v1340_v30, %v285_v24  ;;  %v291_v33 = vshll.u32 %v1341_v32, %v285_v24  ;;  %v294_v35 = vshll.u32 %v1342_v34, %v285_v24 }
  0xc1   : >> { %v297_v37 = vshll.u32 %v1343_v36, %v285_v24  ;;  %v300_v39 = vshll.u32 %v1344_v38, %v285_v24  ;;  %vm303_vm2 = vcmp.lt.s32.totalorder %v284_v23, 1  ;;  %vm304_vm3 = vcmp.lt.s32.totalorder %v284_v23, 2 }
  0xc2   : >> { %v287_v41 = vshrl.u32 %v1340_v30, %v286_v29  ;;  %v289_v42 = vshrl.u32 %v1341_v32, %v286_v29  ;;  %v292_v43 = vshrl.u32 %v1342_v34, %v286_v29  ;;  %v295_v44 = vshrl.u32 %v1343_v36, %v286_v29 }
  0xc3   : >> { %v298_v45 = vshrl.u32 %v1344_v38, %v286_v29  ;;  %v301_v47 = vshrl.u32 %v1345_v46, %v286_v29  ;;  %vm306_vm4 = vcmp.lt.s32.totalorder %v284_v23, 4  ;;  %vm305_vm5 = vcmp.lt.s32.totalorder %v284_v23, 3 }
  0xc4   : >> { %v290_v48 = vor.u32 %v289_v42, %v288_v31  ;;  %v293_v49 = vor.u32 %v292_v43, %v291_v33  ;;  %v296_v50 = vor.u32 %v295_v44, %v294_v35  ;;  %v495_v1 = vshrl.u32 %v1340_v30, %v494_v51 }
  0xc5   : >> { %v299_v52 = vor.u32 %v298_v45, %v297_v37  ;;  %v302_v53 = vor.u32 %v301_v47, %v300_v39  ;;  %v497_v2 = vshrl.u32 %v1341_v32, %v494_v51  ;;  %v500_v9 = vshrl.u32 %v1342_v34, %v494_v51 }
  0xc6   : >> { %v307_v55 = vsel %vm303_vm2, %v287_v41, %v290_v48  ;;  %v308_v56 = vsel %vm306_vm4, %v296_v50, 2102212464  ;;  %v311_v57 = vsel %vm303_vm2, %v290_v48, %v293_v49  ;;  %v315_v58 = vsel %vm303_vm2, %v293_v49, %v296_v50 }
  0xc7   : >> { %v309_v59 = vsel %vm305_vm5, %v293_v49, %v308_v56  ;;  %v312_v60 = vsel %vm306_vm4, %v299_v52, 920167782  ;;  %v316_v61 = vsel %vm306_vm4, %v302_v53, 1326507024  ;;  %v498_v15 = vor.u32 %v497_v2, %v496_v54 }
  0xc8   : >> { %v313_v63 = vsel %vm305_vm5, %v296_v50, %v312_v60  ;;  %v317_v0 = vsel %vm305_vm5, %v299_v52, %v316_v61  ;;  %v310_v3 = vsel %vm304_vm3, %v307_v55, %v309_v59  ;;  %v501_v16 = vor.u32 %v500_v9, %v499_v62 }
  0xc9   : >> { %v314_v4 = vsel %vm304_vm3, %v311_v57, %v313_v63  ;;  %v318_v5 = vsel %vm304_vm3, %v315_v58, %v317_v0  ;;  %v503_v18 = vshrl.u32 %v1343_v36, %v494_v51  ;;  %v505_v19 = vshll.u32 %v1343_v36, %v493_v27 }
  0xca   : >> { %v1647_v11 = vmul.u32.u64.low %v1634_v26, %v318_v5  ;;  %v1648_v12 = vmul.u32.u64.high %v1634_v26, %v318_v5, %v1647_v11  ;;  %v1651_v13 = vmul.u32.u64.low %v1634_v26, %v314_v4  ;;  %v1652_v14 = vmul.u32.u64.high %v1634_v26, %v314_v4, %v1651_v13 }
  0xcb   : >> { %v506_v20 = vshrl.u32 %v1344_v38, %v494_v51  ;;  %v508_v21 = vshll.u32 %v1344_v38, %v493_v27  ;;  %v509_v22 = vshrl.u32 %v1345_v46, %v494_v51  ;;  %v326_v23 = vmul.u32 %v1634_v26, %v310_v3 }
  0xcc   : >> { %v504_v24 = vor.u32 %v503_v18, %v502_v17  ;;  %vm511_vm6 = vcmp.lt.s32.totalorder %v1638_v40, 1  ;;  %vm512_vm7 = vcmp.lt.s32.totalorder %v1638_v40, 2  ;;  %vm328_vm8 = vc.u32 %v1648_v12, %v1651_v13 }
  0xcd   : >> { %v329_v25 = vadd.s32 1, %v1652_v14  ;;  %v507_v29 = vor.u32 %v506_v20, %v505_v19  ;;  %vm513_vm9 = vcmp.lt.s32.totalorder %v1638_v40, 3  ;;  %v510_v30 = vor.u32 %v509_v22, %v508_v21 }
  0xce   : >> { %vm514_vm10 = vcmp.lt.s32.totalorder %v1638_v40, 4  ;;  %v515_v31 = vsel %vm511_vm6, %v495_v1, %v498_v15  ;;  %v519_v27 = vsel %vm511_vm6, %v498_v15, %v501_v16  ;;  %v523_v34 = vsel %vm511_vm6, %v501_v16, %v504_v24 }
  0xcf   : >> { %v330_v32 = vsel %vm328_vm8, %v329_v25, %v1652_v14  ;;  %v516_v26 = vsel %vm514_vm10, %v504_v24, 2102212464  ;;  %v520_v33 = vsel %vm514_vm10, %v507_v29, 920167782  ;;  %v524_v38 = vsel %vm514_vm10, %v510_v30, 1326507024 }
  0xd0   : >> { %v331_v35 = vadd.s32 %v330_v32, %v326_v23  ;;  %v517_v36 = vsel %vm513_vm9, %v501_v16, %v516_v26  ;;  %v521_v37 = vsel %vm513_vm9, %v504_v24, %v520_v33  ;;  %v525_v42 = vsel %vm513_vm9, %v507_v29, %v524_v38 }
  0xd1   : >> { %v518_v39 = vsel %vm512_vm7, %v515_v31, %v517_v36  ;;  %v522_v41 = vsel %vm512_vm7, %v519_v27, %v521_v37  ;;  %v526_v44 = vsel %vm512_vm7, %v523_v34, %v525_v42  ;;  %v327_v62 = vadd.s32 %v1651_v13, %v1648_v12 }
  0xd2   : >> { %v332_v43 = vadd.s32 536870912, %v331_v35  ;;  %v1669_v45 = vmul.u32.u64.low %v1636_v28, %v522_v41  ;;  %v1670_v46 = vmul.u32.u64.high %v1636_v28, %v522_v41, %v1669_v45  ;;  %v534_v50 = vmul.u32 %v1636_v28, %v518_v39 }
  0xd3   : >> { %v1673_v47 = vmul.u32.u64.low %v1636_v28, %v526_v44  ;;  %v1674_v48 = vmul.u32.u64.high %v1636_v28, %v526_v44, %v1673_v47  ;;  %v686_v23 = vstv %s2284_s3  ;;  %v688_v25 = vstv %s2285_s1  ;;  %s2347_s1 = sld [smem:[#allocation65_spill]] }
  0xd4   : >> { %v1676_v49 = vshrl.u32 %v332_v43, 30  ;;  %v537_v52 = vadd.s32 1, %v1670_v46  ;;  %v694_v29 = vstv %s2280_s5  ;;  %v696_v30 = vstv %s2288_s19  ;;  %s2315_s19 = sld [smem:[#allocation54_spill]] }
  0xd5   : >> { %vm536_vm11 = vc.u32 %v1674_v48, %v1669_v45  ;;  %v535_v12 = vadd.s32 %v1669_v45, %v1674_v48  ;;  %v704_v34 = vstv %s2289_s7  ;;  %v714_v38 = vstv %s2283_s9  ;;  %s2310_s7 = sld [smem:[#allocation51_spill]] }
  0xd6   : >> { %v334_v51 = vshll.u32 %v1676_v49, 30  ;;  %v538_v53 = vsel %vm536_vm11, %v537_v52, %v1670_v46  ;;  %v357_v31 = vsub.s32 4, %v1676_v49  ;;  %v716_v39 = vstv %s1524_s25 }
  0xd7   : >> { %v539_v54 = vadd.s32 %v538_v53, %v534_v50  ;;  %v724_v42 = vstv %s2282_s11  ;;  %v732_v43 = vstv %s2291_s18  ;;  %v734_v50 = vstv %s2294_s13  ;;  %s2308_s18 = sld [smem:[#allocation50_spill]] }
  0xd8   : >> { %v335_v40 = vsub.s32 %v331_v35, %v334_v51  ;;  %v706_v35 = vstv %s2290_s16  ;;  %v358_v44 = vsel %vm273_vm14, %v357_v31, %v1676_v49  ;;  %v742_v51 = vstv %s2295_s22  ;;  %s2309_s16 = sld [smem:[#allocation36_spill]] }
  0xd9   : >> { %v540_v56 = vadd.s32 536870912, %v539_v54  ;;  %v752_v49 = vstv %s2297_s2  ;;  %v360_v53 = vsel %vm1696_vm15, 0, %v358_v44  ;;  %s2311_s22 = sld [smem:[#allocation37_spill]]  ;;  %vm363_vm2 = vweird.f32 %v1622_v6 }
  0xda   : >> { %v337_v55 = vsub.s32 0, %v335_v40  ;;  %s2314_s13 = sld [smem:[#allocation53_spill]]  ;;  %v893_v31 = vstv %s1593_s12  ;;  %vm571_vm9 = vweird.f32 %v1624_v7 }
  0xdb   : >> { %v1683_v58 = vshrl.u32 %v540_v56, 30  ;;  %v764_v56 = vstv %s2300_s20 }
  0xdc   : >> { %v1089_v57 = vmin.u32 %v337_v55, %v335_v40  ;;  %v762_v55 = vstv %s2299_s23 }
  0xdd   : >> { %v542_v60 = vshll.u32 %v1683_v58, 30  ;;  %v565_v48 = vsub.s32 4, %v1683_v58 }
  0xde   : >> { %v339_v59 = vclz %v1089_v57 }
  0xdf   : >> { %v543_v28 = vsub.s32 %v539_v54, %v542_v60  ;;  %v754_v54 = vstv %s2298_s29  ;;  %v772_v60 = vstv %s2302_s30  ;;  %s2316_s30 = sld [smem:[#allocation58_spill]] }
  0xe0   : >> { %v1090_v61 = vadd.s32 4294967294, %v339_v59  ;;  %v770_v59 = vstv %s2301_s0  ;;  %s2317_s0 = sld [smem:[#allocation61_spill]] }
  0xe1   : >> { %v545_v0 = vsub.s32 0, %v543_v28 }
  0xe2   : >> { %vm1091_vm12 = vcmp.lt.s32.totalorder %v1090_v61, 0 }
  0xe3   : >> { %v342_v63 = vsel %vm1091_vm12, 0, %v1090_v61  ;;  %v1097_v4 = vmin.u32 %v545_v0, %v543_v28  ;;  %v566_v61 = vsel %vm481_vm0, %v565_v48, %v1683_v58  ;;  %v467_v0 = vadd.s32 3, %v360_v53 }
  0xe4   : >> { %v343_v1 = vsub.s32 32, %v342_v63  ;;  %v344_v2 = vshll.u32 %v335_v40, %v342_v63  ;;  %v347_v3 = vsub.s32 4294967266, %v342_v63  ;;  %v744_v40 = vstv %s2296_s8  ;;  %s2312_s8 = sld [smem:[#allocation52_spill]] }
  0xe5   : >> { %v547_v11 = vclz %v1097_v4  ;;  %v790_v63 = vstv %s2305_s21  ;;  %v802_v4 = vstv %s2308_s18  ;;  %s2319_s21 = sld [smem:[#allocation55_spill]] }
  0xe6   : >> { %v345_v5 = vshrl.u32 %v327_v62, %v343_v1  ;;  %v348_v9 = vadd.s32 127, %v347_v3  ;;  %v782_v62 = vstv %s2304_s28  ;;  %v800_v3 = vstv %s2307_s6  ;;  %s2318_s28 = sld [smem:[#allocation63_spill]] }
  0xe7   : >> { %v1098_v16 = vadd.s32 4294967294, %v547_v11  ;;  %v568_v11 = vsel %vm480_vm1, 0, %v566_v61  ;;  %s2321_s6 = sld [smem:[#allocation57_spill]] }
  0xe8   : >> { %v346_v14 = vor.u32 %v345_v5, %v344_v2  ;;  %v349_v15 = vshll.u32 %v348_v9, 23  ;;  %v792_v2 = vstv %s2306_s15  ;;  %v808_v5 = vstv %s2309_s16  ;;  %s2323_s18 = sld [smem:[#allocation60_spill]] }
  0xe9   : >> { %vm1099_vm13 = vcmp.lt.s32.totalorder %v1098_v16, 0  ;;  %v810_v9 = vstv %s2310_s7  ;;  %s2322_s7 = sld [smem:[#allocation59_spill]] }
  0xea   : >> { %v350_v17 = vor.u32 4788187, %v349_v15  ;;  %v353_v18 = vcvt.s32.f32 %v346_v14  ;;  %v550_v19 = vsel %vm1099_vm13, 0, %v1098_v16  ;;  %v818_v14 = vstv %s2311_s22 }
  0xeb   : >> { %v551_v20 = vsub.s32 32, %v550_v19  ;;  %v552_v21 = vshll.u32 %v543_v28, %v550_v19  ;;  %v555_v22 = vsub.s32 4294967266, %v550_v19  ;;  %v780_v28 = vstv %s2303_s4  ;;  %s2320_s4 = sld [smem:[#allocation56_spill]] }
  0xec   : >> { %v351_v13 = vand.u32 2147483647, %v350_v17  ;;  %v820_v15 = vstv %s2312_s8  ;;  %v828_v16 = vstv %s2313_s10  ;;  %v830_v17 = vstv %s2314_s13  ;;  %s2324_s13 = sld [smem:[#allocation62_spill]] }
  0xed   : >> { %v553_v27 = vshrl.u32 %v535_v12, %v551_v20  ;;  %v556_v32 = vadd.s32 127, %v555_v22  ;;  %v468_v12 = vand.u32 3, %v467_v0  ;;  %v675_v19 = vadd.s32 3, %v568_v11 }
  0xee   : >> { %v354_v24 = vmul.f32 %v353_v18, %v351_v13  ;;  %v364_v18 = vand.u32 3, %v360_v53  ;;  %v865_v13 = vstv %s2315_s19  ;;  %v870_v20 = vstv %s2316_s30 }
  0xef   : >> { %v554_v36 = vor.u32 %v553_v27, %v552_v21  ;;  %v557_v37 = vshll.u32 %v556_v32, 23  ;;  %v876_v21 = vstv %s2317_s0  ;;  %v882_v22 = vstv %s2318_s28  ;;  %s2344_s0 = sld [smem:[#allocation64_spill]] }
  0xf0   : >> { %v355_v33 = vxor.u32 2147483648, %v354_v24  ;;  %v905_v32 = vstv %s1596_s27  ;;  %v915_v26 = vstv %s2321_s6  ;;  %vm369_vm3 = vcmp.eq.s32.totalorder %v364_v18, 2  ;;  %s2346_s6 = sld [smem:[#allocation66_spill]] }
  0xf1   : >> { %v558_v46 = vor.u32 4788187, %v557_v37  ;;  %v561_v47 = vcvt.s32.f32 %v554_v36  ;;  %v903_v27 = vstv %s2320_s4  ;;  %v927_v36 = vstv %s2322_s7 }
  0xf2   : >> { %v356_v41 = vsel %vm273_vm14, %v355_v33, %v354_v24  ;;  %v891_v24 = vstv %s2319_s21  ;;  %v917_v33 = vstv %s1599_s17  ;;  %vm473_vm4 = vcmp.eq.s32.totalorder %v468_v12, 2 }
  0xf3   : >> { %v359_v45 = vsel %vm1696_vm15, %v1622_v6, %v356_v41  ;;  %v559_v52 = vand.u32 2147483647, %v558_v46  ;;  %v572_v41 = vand.u32 3, %v568_v11  ;;  %vm366_vm5 = vcmp.eq.s32.totalorder %v364_v18, 0 }
  0xf4   : >> { %1200 = vcosq.f32 %v359_v45  ;;  %vm470_vm6 = vcmp.eq.s32.totalorder %v468_v12, 0  ;;  %vm365_vm7 = vcmp.lt.s32.totalorder %v364_v18, 2  ;;  %vm469_vm8 = vcmp.lt.s32.totalorder %v468_v12, 2 }
  0xf5   : >> { %1202 = vsinq.f32 %v359_v45  ;;  %v562_v57 = vmul.f32 %v561_v47, %v559_v52  ;;  %v676_v47 = vand.u32 3, %v675_v19  ;;  %vm573_vm10 = vcmp.lt.s32.totalorder %v572_v41, 2 }
  0xf6   : >> { %vm574_vm11 = vcmp.eq.s32.totalorder %v572_v41, 0  ;;  %vm577_vm12 = vcmp.eq.s32.totalorder %v572_v41, 2  ;;  %s2351_s2 = sshll.u32 %s2346_s6, 3  ;;  %s259_s6 = sadd.s32 1, %s2346_s6  }
  0xf7   : >> { %v563_v1 = vxor.u32 2147483648, %v562_v57  ;;  %vm677_vm13 = vcmp.lt.s32.totalorder %v676_v47, 2  ;;  %vm678_vm14 = vcmp.eq.s32.totalorder %v676_v47, 0  ;;  %vm681_vm15 = vcmp.eq.s32.totalorder %v676_v47, 2  ;;  %s957_s3 = scalar_lea.vmem %s2347_s1, %s2351_s2  ;;  %p256_p8 = scmp.ge.s32.totalorder %s259_s6, 4  }
  0xf8   : > { %s2353_s1 = sld [smem:[#allocation65_spill]] (%p256_p8)  ;;  %s1346_s21 = smov (%p256_p8), [#allocation7]  }
  0xf9   : >> { %v564_v58 = vsel %vm481_vm0, %v563_v1, %v562_v57  ;;  %s2354_s2 = sld [smem:[#allocation21_spill]] (%p256_p8)  ;;  %s1248_s28 = sshll.u32 (%p256_p8), %s1346_s21, 4  ;;  %s1249_s28 = int_to_ptr.vmem [resolvable:$false] %s1248_s28 }
  0xfa   : >> { %v567_v10 = vsel %vm480_vm1, %v1624_v7, %v564_v58  ;;  %s2356_s7 = sld [smem:[#allocation68_spill]] (%p256_p8) }
  0xfb   : >> { %1204 = vcosq.f32 %v567_v10 }
  0xfc   : >> { %1206 = vsinq.f32 %v567_v10 }
  0xfe   : > { %s975_s9 = sshll.u32 (%p256_p8), %s2353_s1, 4  ;;  %s2099_s9 = int_to_ptr.vmem [resolvable:$true] %s975_s9 }
  0xff   : > { %s960_s10 = scalar_lea.sflag (%p256_p8), [#allocation6], %s2354_s2  ;;  %s1244_s11 = scalar_lea.vmem (%p256_p8), %s2099_s9, 512 }
 0x100   : > { %p1245_p12 = scmp.ne.s32.totalorder (%p256_p8), %s2099_s9, %s1244_s11  ;;  %p1251_p3 = scmp.lt.s32.totalorder (%p256_p8), %s2099_s9, %s1249_s28 }
 0x101   : >> { %v1201_v37 = vpop.eup %1200 }
 0x102   : >> { %v1203_v45 = vpop.eup %1202  ;;  %v370_v46 = vxor.u32 2147483648, %v1201_v37  ;;  %p1246_p0 = pnand (%p256_p8), %p1245_p12, %p1418_p9 }
 0x103   : >> { %v367_v48 = vxor.u32 2147483648, %v1203_v45 }
 0x104   : >> { %v371_v53 = vsel %vm369_vm3, %v370_v46, %v1203_v45  ;;  %v475_v57 = vsel %vm473_vm4, %v370_v46, %v1203_v45  ;;  %p1247_p1 = pneg (%p256_p8), %p1246_p0 }
 0x105   : >> { %v368_v1 = vsel %vm366_vm5, %v1201_v37, %v367_v48  ;;  %v472_v58 = vsel %vm470_vm6, %v1201_v37, %v367_v48 }
 0x106   : >> { %v372_v11 = vsel %vm365_vm7, %v368_v1, %v371_v53  ;;  %v476_v10 = vsel %vm469_vm8, %v472_v58, %v475_v57 }
 0x107   : >> { %v1767_v18 = vsel %vm363_vm2, nan, %v372_v11  ;;  %v1771_v12 = vsel %vm363_vm2, nan, %v476_v10 }
 0x108   : >> { %v687_v19 = vmul.f32 %v686_v23, %v1767_v18  ;;  %v689_v37 = vmul.f32 %v688_v25, %v1771_v12  ;;  %v691_v45 = vmul.f32 %v688_v25, %v1767_v18  ;;  %v692_v46 = vmul.f32 %v686_v23, %v1771_v12  ;;  %v1205_v25 = vpop.eup %1204 }
 0x109   : >> { %v715_v6 = vmul.f32 %v714_v38, %v1767_v18  ;;  %v717_v48 = vmul.f32 %v716_v39, %v1771_v12  ;;  %v1794_v53 = vmul.f32 %v716_v39, %v1767_v18  ;;  %v1799_v57 = vmul.f32 %v714_v38, %v1771_v12  ;;  %v1207_v10 = vpop.eup %1206 }
 0x10a   : >> { %v690_v1 = vsub.f32 %v687_v19, %v689_v37  ;;  %v693_v23 = vadd.f32 %v692_v46, %v691_v45  ;;  %v725_v58 = vmul.f32 %v724_v42, %v1767_v18  ;;  %v727_v11 = vmul.f32 %v726_v8, %v1771_v12 }
 0x10b   : >> { %v578_v0 = vxor.u32 2147483648, %v1205_v25  ;;  %v718_v39 = vadd.f32 %v717_v48, %v715_v6  ;;  %v721_v61 = vsub.f32 %v1794_v53, %v1799_v57  ;;  %v729_v38 = vmul.f32 %v726_v8, %v1767_v18 }
 0x10c   : >> { %v575_v19 = vxor.u32 2147483648, %v1207_v10  ;;  %v728_v37 = vsub.f32 %v725_v58, %v727_v11  ;;  %v730_v45 = vmul.f32 %v724_v42, %v1771_v12  ;;  %v753_v46 = vmul.f32 %v752_v49, %v1767_v18 }
 0x10d   : >> { %v579_v52 = vsel %vm577_vm12, %v578_v0, %v1207_v10  ;;  %v683_v6 = vsel %vm681_vm15, %v578_v0, %v1207_v10  ;;  %v755_v48 = vmul.f32 %v754_v54, %v1771_v12  ;;  %v757_v8 = vmul.f32 %v754_v54, %v1767_v18 }
 0x10e   : >> { %v576_v42 = vsel %vm574_vm11, %v1205_v25, %v575_v19  ;;  %v680_v53 = vsel %vm678_vm14, %v1205_v25, %v575_v19  ;;  %v731_v57 = vadd.f32 %v730_v45, %v729_v38  ;;  %v758_v0 = vmul.f32 %v752_v49, %v1771_v12 }
 0x10f   : >> { %v580_v58 = vsel %vm573_vm10, %v576_v42, %v579_v52  ;;  %v684_v11 = vsel %vm677_vm13, %v680_v53, %v683_v6  ;;  %v756_v10 = vadd.f32 %v755_v48, %v753_v46  ;;  %v763_v54 = vmul.f32 %v762_v55, %v1767_v18 }
 0x110   : >> { %v1838_v25 = vsel %vm571_vm9, nan, %v580_v58  ;;  %v1842_v38 = vsel %vm571_vm9, nan, %v684_v11  ;;  %v759_v49 = vsub.f32 %v757_v8, %v758_v0  ;;  %v765_v41 = vmul.f32 %v764_v56, %v1771_v12 }
 0x111   : >> { %v695_v47 = vmul.f32 %v694_v29, %v1838_v25  ;;  %v697_v52 = vmul.f32 %v696_v30, %v1842_v38  ;;  %v699_v19 = vmul.f32 %v696_v30, %v1838_v25  ;;  %v700_v7 = vmul.f32 %v694_v29, %v1842_v38 }
 0x112   : >> { %v705_v45 = vmul.f32 %v704_v34, %v1838_v25  ;;  %v707_v46 = vmul.f32 %v706_v35, %v1842_v38  ;;  %v709_v6 = vmul.f32 %v706_v35, %v1838_v25  ;;  %v710_v48 = vmul.f32 %v704_v34, %v1842_v38 }
 0x113   : >> { %v698_v30 = vsub.f32 %v695_v47, %v697_v52  ;;  %v701_v8 = vadd.f32 %v700_v7, %v699_v19  ;;  %v733_v29 = vmul.f32 %v732_v43, %v1838_v25  ;;  %v735_v42 = vmul.f32 %v734_v50, %v1842_v38 }
 0x114   : >> { %v708_v53 = vadd.f32 %v707_v46, %v705_v45  ;;  %v711_v0 = vsub.f32 %v709_v6, %v710_v48  ;;  %v737_v58 = vmul.f32 %v734_v50, %v1838_v25  ;;  %v738_v35 = vmul.f32 %v732_v43, %v1842_v38 }
 0x115   : >> { %v702_v11 = vadd.f32 %v698_v30, %v690_v1  ;;  %v703_v34 = vadd.f32 %v701_v8, %v693_v23  ;;  %v736_v44 = vsub.f32 %v733_v29, %v735_v42  ;;  %v743_v47 = vmul.f32 %v742_v51, %v1838_v25 }
 0x116   : >> { %v739_v52 = vadd.f32 %v738_v35, %v737_v58  ;;  %v745_v19 = vmul.f32 %v744_v40, %v1842_v38  ;;  %v747_v7 = vmul.f32 %v744_v40, %v1838_v25  ;;  %v748_v43 = vmul.f32 %v742_v51, %v1842_v38 }
 0x117   : >> { %v712_v50 = vadd.f32 %v708_v53, %v702_v11  ;;  %v713_v1 = vadd.f32 %v711_v0, %v703_v34  ;;  %v740_v23 = vadd.f32 %v736_v44, %v728_v37  ;;  %v766_v45 = vsub.f32 %v763_v54, %v765_v41 }
 0x118   : >> { %v741_v46 = vadd.f32 %v739_v52, %v731_v57  ;;  %v746_v6 = vadd.f32 %v745_v19, %v743_v47  ;;  %v749_v48 = vsub.f32 %v747_v7, %v748_v43  ;;  %v767_v30 = vmul.f32 %v764_v56, %v1767_v18 }
 0x119   : >> { %v1898_v40 = vadd.f32 %v718_v39, %v712_v50  ;;  %v723_v8 = vadd.f32 %v721_v61, %v713_v1  ;;  %v768_v51 = vmul.f32 %v762_v55, %v1771_v12  ;;  %v771_v44 = vmul.f32 %v770_v59, %v1838_v25 }
 0x11a   : >> { %v750_v37 = vadd.f32 %v746_v6, %v740_v23  ;;  %v751_v54 = vadd.f32 %v749_v48, %v741_v46  ;;  %v773_v57 = vmul.f32 %v772_v60, %v1842_v38  ;;  %v775_v56 = vmul.f32 %v772_v60, %v1838_v25 }
 0x11b   : >> { %v769_v61 = vadd.f32 %v768_v51, %v767_v30  ;;  %v776_v55 = vmul.f32 %v770_v59, %v1842_v38  ;;  %v781_v39 = vmul.f32 %v780_v28, %v1838_v25  ;;  %v783_v41 = vmul.f32 %v782_v62, %v1842_v38 }
 0x11c   : >> { %v760_v29 = vadd.f32 %v756_v10, %v750_v37  ;;  %v761_v42 = vadd.f32 %v759_v49, %v751_v54  ;;  %v774_v53 = vsub.f32 %v771_v44, %v773_v57  ;;  %v785_v0 = vmul.f32 %v782_v62, %v1838_v25 }
 0x11d   : >> { %v777_v60 = vadd.f32 %v776_v55, %v775_v56  ;;  %v784_v58 = vadd.f32 %v783_v41, %v781_v39  ;;  %v786_v59 = vmul.f32 %v780_v28, %v1842_v38  ;;  %v791_v35 = vmul.f32 %v790_v63, %v1767_v18 }
 0x11e   : >> { %v778_v11 = vadd.f32 %v774_v53, %v766_v45  ;;  %v793_v10 = vmul.f32 %v792_v2, %v1771_v12  ;;  %v795_v49 = vmul.f32 %v792_v2, %v1767_v18  ;;  %v796_v62 = vmul.f32 %v790_v63, %v1771_v12 }
 0x11f   : >> { %v779_v34 = vadd.f32 %v777_v60, %v769_v61  ;;  %v787_v28 = vsub.f32 %v785_v0, %v786_v59  ;;  %v801_v47 = vmul.f32 %v800_v3, %v1767_v18  ;;  %v803_v52 = vmul.f32 %v802_v4, %v1771_v12 }
 0x120   : >> { %v788_v19 = vadd.f32 %v784_v58, %v778_v11  ;;  %v794_v7 = vadd.f32 %v793_v10, %v791_v35  ;;  %v797_v43 = vsub.f32 %v795_v49, %v796_v62  ;;  %v805_v2 = vmul.f32 %v802_v4, %v1767_v18 }
 0x121   : >> { %v789_v63 = vadd.f32 %v787_v28, %v779_v34  ;;  %v804_v50 = vsub.f32 %v801_v47, %v803_v52  ;;  %v806_v1 = vmul.f32 %v800_v3, %v1771_v12  ;;  %v809_v23 = vmul.f32 %v808_v5, %v1838_v25 }
 0x122   : >> { %v798_v45 = vadd.f32 %v794_v7, %v788_v19  ;;  %v811_v46 = vmul.f32 %v810_v9, %v1842_v38  ;;  %v813_v6 = vmul.f32 %v810_v9, %v1838_v25  ;;  %v814_v4 = vmul.f32 %v808_v5, %v1842_v38 }
 0x123   : >> { %v799_v48 = vadd.f32 %v797_v43, %v789_v63  ;;  %v807_v30 = vadd.f32 %v806_v1, %v805_v2  ;;  %v819_v3 = vmul.f32 %v818_v14, %v1838_v25  ;;  %v821_v51 = vmul.f32 %v820_v15, %v1842_v38 }
 0x124   : >> { %v812_v44 = vsub.f32 %v809_v23, %v811_v46  ;;  %v815_v37 = vadd.f32 %v814_v4, %v813_v6  ;;  %v823_v54 = vmul.f32 %v820_v15, %v1838_v25  ;;  %v824_v9 = vmul.f32 %v818_v14, %v1842_v38 }
 0x125   : >> { %v822_v57 = vadd.f32 %v821_v51, %v819_v3  ;;  %v829_v5 = vmul.f32 %v828_v16, %v1767_v18  ;;  %v831_v56 = vmul.f32 %v830_v17, %v1771_v12  ;;  %v833_v61 = vmul.f32 %v830_v17, %v1767_v18 }
 0x126   : >> { %v816_v55 = vadd.f32 %v812_v44, %v804_v50  ;;  %v817_v39 = vadd.f32 %v815_v37, %v807_v30  ;;  %v825_v41 = vsub.f32 %v823_v54, %v824_v9  ;;  %v834_v53 = vmul.f32 %v828_v16, %v1771_v12 }
 0x127   : >> { %v832_v15 = vadd.f32 %v831_v56, %v829_v5  ;;  %v838_v14 = vmul.f32 %v1898_v40, %v1767_v18  ;;  %v839_v0 = vmul.f32 %v723_v8, %v1771_v12  ;;  %v841_v60 = vmul.f32 %v723_v8, %v1767_v18 }
 0x128   : >> { %v826_v58 = vadd.f32 %v822_v57, %v816_v55  ;;  %v827_v59 = vadd.f32 %v825_v41, %v817_v39  ;;  %v835_v35 = vsub.f32 %v833_v61, %v834_v53  ;;  %v842_v17 = vmul.f32 %v1898_v40, %v1771_v12 }
 0x129   : >> { %v840_v11 = vsub.f32 %v838_v14, %v839_v0  ;;  %v844_v10 = vmul.f32 %v760_v29, %v1838_v25  ;;  %v845_v49 = vmul.f32 %v761_v42, %v1842_v38  ;;  %v847_v16 = vmul.f32 %v761_v42, %v1838_v25 }
 0x12a   : >> { %v836_v62 = vadd.f32 %v832_v15, %v826_v58  ;;  %v837_v34 = vadd.f32 %v835_v35, %v827_v59  ;;  %v843_v28 = vadd.f32 %v842_v17, %v841_v60  ;;  %v848_v47 = vmul.f32 %v760_v29, %v1842_v38 }
 0x12b   : >> { %v1997_v52 = vsub.f32 %v844_v10, %v845_v49  ;;  %v850_v8 = vmul.f32 %v798_v45, %v1838_v25  ;;  %v851_v19 = vmul.f32 %v799_v48, %v1842_v38  ;;  %v853_v40 = vmul.f32 %v799_v48, %v1838_v25 }
 0x12c   : >> { %v2002_v7 = vadd.f32 %v848_v47, %v847_v16  ;;  %v854_v43 = vmul.f32 %v798_v45, %v1842_v38  ;;  %v856_v2 = vmul.f32 %v836_v62, %v1767_v18  ;;  %v857_v42 = vmul.f32 %v837_v34, %v1771_v12 }
 0x12d   : >> { %v2007_v63 = vadd.f32 %v851_v19, %v850_v8  ;;  %v859_v29 = vmul.f32 %v837_v34, %v1767_v18  ;;  %v860_v50 = vmul.f32 %v836_v62, %v1771_v12  ;;  %v862_v1 = vmul.f32 %v840_v11, %v840_v11 }
 0x12e   : >> { %v2011_v23 = vsub.f32 %v853_v40, %v854_v43  ;;  %v2013_v46 = vadd.f32 %v857_v42, %v856_v2  ;;  %v863_v25 = vmul.f32 %v843_v28, %v843_v28  ;;  %v867_v38 = vmul.f32 %v1997_v52, %v1997_v52 }
 0x12f   : >> { %v861_v45 = vsub.f32 %v859_v29, %v860_v50  ;;  %v868_v6 = vmul.f32 %v2002_v7, %v2002_v7  ;;  %v873_v18 = vmul.f32 %v2007_v63, %v2007_v63  ;;  %v885_v12 = vmul.f32 %v1997_v52, %v840_v11 }
 0x130   : >> { %v864_v4 = vadd.f32 %v863_v25, %v862_v1  ;;  %v874_v48 = vmul.f32 %v2011_v23, %v2011_v23  ;;  %v879_v30 = vmul.f32 %v2013_v46, %v2013_v46  ;;  %v886_v3 = vmul.f32 %v2002_v7, %v843_v28 }
 0x131   : >> { %v869_v51 = vadd.f32 %v868_v6, %v867_v38  ;;  %v880_v44 = vmul.f32 %v861_v45, %v861_v45  ;;  %v888_v37 = vmul.f32 %v2002_v7, %v840_v11  ;;  %v889_v54 = vmul.f32 %v1997_v52, %v843_v28 }
 0x132   : >> { %v866_v9 = vmul.f32 %v865_v13, %v864_v4  ;;  %v875_v57 = vadd.f32 %v874_v48, %v873_v18  ;;  %v887_v5 = vadd.f32 %v886_v3, %v885_v12  ;;  %v897_v56 = vmul.f32 %v2007_v63, %v840_v11 }
 0x133   : >> { %v871_v61 = vmul.f32 %v870_v20, %v869_v51  ;;  %v881_v55 = vadd.f32 %v880_v44, %v879_v30  ;;  %v890_v39 = vsub.f32 %v888_v37, %v889_v54  ;;  %v898_v41 = vmul.f32 %v2011_v23, %v843_v28 }
 0x134   : >> { %v877_v53 = vmul.f32 %v876_v21, %v875_v57  ;;  %v892_v15 = vmul.f32 %v891_v24, %v887_v5  ;;  %v900_v14 = vmul.f32 %v2011_v23, %v840_v11  ;;  %v901_v13 = vmul.f32 %v2007_v63, %v843_v28 }
 0x135   : >> { %v872_v0 = vadd.f32 %v871_v61, %v866_v9  ;;  %v883_v60 = vmul.f32 %v882_v22, %v881_v55  ;;  %v894_v58 = vmul.f32 %v893_v31, %v890_v39  ;;  %v899_v20 = vadd.f32 %v898_v41, %v897_v56 }
 0x136   : >> { %v902_v59 = vsub.f32 %v900_v14, %v901_v13  ;;  %v909_v35 = vmul.f32 %v2013_v46, %v840_v11  ;;  %v910_v17 = vmul.f32 %v861_v45, %v843_v28  ;;  %v912_v10 = vmul.f32 %v861_v45, %v840_v11 }
 0x137   : >> { %v878_v21 = vadd.f32 %v877_v53, %v872_v0  ;;  %v895_v49 = vsub.f32 %v892_v15, %v894_v58  ;;  %v904_v24 = vmul.f32 %v903_v27, %v899_v20  ;;  %v913_v16 = vmul.f32 %v2013_v46, %v843_v28 }
 0x138   : >> { %v906_v62 = vmul.f32 %v905_v32, %v902_v59  ;;  %v911_v22 = vadd.f32 %v910_v17, %v909_v35  ;;  %v921_v31 = vmul.f32 %v2007_v63, %v1997_v52  ;;  %v922_v34 = vmul.f32 %v2011_v23, %v2002_v7 }
 0x139   : >> { %v884_v47 = vadd.f32 %v883_v60, %v878_v21  ;;  %v914_v8 = vsub.f32 %v912_v10, %v913_v16  ;;  %v924_v11 = vmul.f32 %v2011_v23, %v1997_v52  ;;  %v925_v27 = vmul.f32 %v2007_v63, %v2002_v7 }
 0x13a   : >> { %v907_v28 = vsub.f32 %v904_v24, %v906_v62  ;;  %v916_v32 = vmul.f32 %v915_v26, %v911_v22  ;;  %v923_v19 = vadd.f32 %v922_v34, %v921_v31  ;;  %v933_v40 = vmul.f32 %v2013_v46, %v1997_v52 }
 0x13b   : >> { %v896_v43 = vadd.f32 %v895_v49, %v884_v47  ;;  %v918_v2 = vmul.f32 %v917_v33, %v914_v8  ;;  %v926_v42 = vsub.f32 %v924_v11, %v925_v27  ;;  %v934_v29 = vmul.f32 %v861_v45, %v2002_v7 }
 0x13c   : >> { %v928_v50 = vmul.f32 %v927_v36, %v923_v19  ;;  %v936_v1 = vmul.f32 %v861_v45, %v1997_v52  ;;  %v937_v26 = vmul.f32 %v2013_v46, %v2002_v7  ;;  %v945_v25 = vmul.f32 %v2013_v46, %v2007_v63 }
 0x13d   : >> { %v908_v38 = vadd.f32 %v907_v28, %v896_v43  ;;  %v919_v6 = vsub.f32 %v916_v32, %v918_v2  ;;  %v2345_v18 = vstv %s1602_s24  ;;  %v935_v12 = vadd.f32 %v934_v29, %v933_v40 }
 0x13e   : >> { %v930_v33 = vmul.f32 %v2345_v18, %v926_v42  ;;  %v938_v4 = vsub.f32 %v936_v1, %v937_v26  ;;  %v946_v48 = vmul.f32 %v861_v45, %v2011_v23  ;;  %v948_v36 = vmul.f32 %v861_v45, %v2007_v63 }
 0x13f   : >> { %v949_v52 = vmul.f32 %v2013_v46, %v2011_v23  ;;  %v920_v7 = vadd.f32 %v919_v6, %v908_v38  ;;  %v2348_v3 = vstv %s2323_s18  ;;  %v953_v44 = vstv %s2344_s0  ;;  %s2352_s0 = sld [smem:[#allocation14_spill]] (%p256_p8)  ;;  %s1250_s18 = scalar_lea.vmem (%p256_p8), %s1249_s28, 1024 }
 0x140   : >> { %v931_v30 = vsub.f32 %v928_v50, %v930_v33  ;;  %v940_v51 = vmul.f32 %v2348_v3, %v935_v12  ;;  %v2349_v37 = vstv %s1605_s26  ;;  %v947_v9 = vadd.f32 %v946_v48, %v945_v25  ;;  %p1252_p5 = scmp.lt.s32.totalorder (%p256_p8), %s1250_s18, %s1244_s11 }
 0x141   : >> { %v942_v54 = vmul.f32 %v2349_v37, %v938_v4  ;;  %v950_v57 = vsub.f32 %v948_v36, %v949_v52  ;;  %v2350_v61 = vstv %s2324_s13 }
 0x142   : >> { %v932_v5 = vadd.f32 %v931_v30, %v920_v7  ;;  %v952_v55 = vmul.f32 %v2350_v61, %v947_v9  ;;  %p1253_p6 = por (%p256_p8), %p1252_p5, %p1251_p3 }
 0x143   : >> { %v943_v56 = vsub.f32 %v940_v51, %v942_v54  ;;  %v954_v39 = vmul.f32 %v953_v44, %v950_v57 }
 0x144   : > { %p1254_p7 = pnand (%p256_p8), %p1253_p6, %p1247_p1 }
 0x145   : >> { %v944_v41 = vadd.f32 %v943_v56, %v932_v5  ;;  %v955_v53 = vsub.f32 %v952_v55, %v954_v39  ;;  %258 = sbr.rel (!%p256_p8) target bundleno = 159 (0x9f), region = 79  ;;  %s1110_s6 = sshll.u32 (%p256_p8), %s2352_s0, 9 }
 0x146   : > { %s2096_s8 = scalar_lea.hbm (%p256_p8), %s2356_s7, %s1110_s6 }
 0x147   : >> { %v956_v63 = vadd.f32 %v955_v53, %v944_v41 }
 0x149   : >> { %958 = vst [vmem:[%s957_s3] sm:$0xff] %v956_v63 }
 0x14a   : > { %1257 = shalt.err (!%p1254_p7)
}
 0x14b   : > { %s1258_s22 = scalar_lea.hbm %s2096_s8, 512  ;;  %s1262_s25 = scalar_lea.hbm %s2356_s7, 1024 }
 0x14c   : > { %p1259_p10 = scmp.ne.s32.totalorder %s2096_s8, %s1258_s22  ;;  %p1263_p2 = scmp.lt.s32.totalorder %s2096_s8, %s2356_s7 }
 0x14d   : > { %p1264_p8 = scmp.lt.s32.totalorder %s1262_s25, %s1258_s22 }
 0x14e   : > { %p1260_p4 = pnand %p1259_p10, %p1418_p9 }
 0x14f   : > { %p1265_p12 = por %p1264_p8, %p1263_p2 }
 0x150   : > { %p1261_p13 = pneg %p1260_p4 }
 0x152   : > { %p1266_p0 = pnand %p1265_p12, %p1261_p13 }
 0x154   : > { %1269 = shalt.err (!%p1266_p0)
}
 0x155   : > { %s1347_s17 = smov 128   ;;  %s1348_s26 = smov 8  }
 0x156   : > { %1121 = dma.vmem_to_hbm [thread:$0]  (%p1418_p9), %s2099_s9, 512, %s2096_s8, %s960_s10, %s1347_s17, %s1347_s17, %s1348_s26  }
 0x157 PF: > { %s2357_s12 = sld [smem:[#allocation11_spill]] }
 0x158   : > { %s2359_s27 = sld [smem:[#allocation16_spill]] }
 0x15d   : > { %s990_s15 = sand.u32 1, %s2357_s12  }
 0x15e   : > { %p2360_p1 = scmp.ge.s32.totalorder %s2359_s27, 2  ;;  %s991_s29 = scalar_lea.sflag [#allocation6], %s990_s15 }
 0x160   : > { %p1128_p3 = pnand %p2360_p1, %p1425_p11 }
 0x162   : > { %p1129_p5 = pneg %p1128_p3 }
 0x164   : > { %1305 = dma.done.wait (%p1129_p5), %s991_s29, 512  }
 0x165   : > { %1307 = vsyncadd (%p1129_p5), %s991_s29, 4294966784  ;;  %s22_s17 = sadd.s32 1, %s2359_s27   ;;  %s2361_s12 = sld [smem:[#allocation12_spill]] }
 0x166   : > { %p19_p6 = scmp.ge.s32.totalorder %s22_s17, 4   ;;  %s2362_s13 = sld [smem:[#allocation13_spill]] }
 0x167   : > { %s2363_s14 = sld [smem:[#allocation19_spill]] }
 0x168   : > { %s2364_s15 = sld [smem:[#allocation15_spill]]  ;;  %21 = sbr.rel (!%p19_p6) target bundleno = 13 (0xd), region = 90 }
 0x169   : > { %s2365_s16 = sld [smem:[#allocation17_spill]] }
 0x16d   :  { %996 = vsyncpa [#allocation5], 1 }
 0x16e   :  { %998 = vsyncpa [#allocation5 + $0x1], 1 }
 0x16f   :  { %999 = vsyncpa [#allocation6], 1 }
 0x170   :  { %1001 = vsyncpa [#allocation6 + $0x1], 1 }

</bundles_post_ra>
